<compile_context>
chip_gen: v7x
topology: tpu7x:2x2x1
jax: 0.10.0
libtpu: 0.0.40
codegen_flags: <defaults>
</compile_context>

<pallas_src>
import functools
import math

import jax
import jax.numpy as jnp
from jax.experimental import pallas as pl
from jax.experimental.pallas import tpu as pltpu

EPS = 1e-5
COMPUTE_DTYPE = jnp.bfloat16      # MXU input dtype (f32 accumulation)


# --------------------------------------------------------------------------
# Kernels
# --------------------------------------------------------------------------
def _conv_bn_stats_kernel(x_ref, w_ref, insc_ref, insh_ref, alpha_ref,
                          y_ref, stats_ref, *, apply_input_act):
    """One batch-block: (optional bn+prelu on input) -> conv3x3x3 -> partial
    BN statistics.

    x_ref    : (1, D, H, W*C)        unpadded input (f32 x, or bf16 y1)
    w_ref    : (3, 3*W*C, W*C)       kh-folded block-Toeplitz weights (bf16)
    insc/insh: (1, W*C)              per-lane affine for the fused input BN
    alpha_ref: (1,) SMEM             shared PReLU slope
    y_ref    : (1, D, H, W*C) bf16   pre-BN conv output
    stats_ref: (1, 1, 2*W*C) f32     per-block [sum | sum-of-squares]
    """
    _, D, H, WC = x_ref.shape

    v = x_ref[0]
    if apply_input_act:
        alpha = alpha_ref[0]
        insc = insc_ref[...].reshape(1, 1, WC)
        insh = insh_ref[...].reshape(1, 1, WC)
        vf = v.astype(jnp.float32) * insc + insh        # bn1 (global stats)
        vf = jnp.where(vf >= 0.0, vf, alpha * vf)       # prelu
        v = vf.astype(COMPUTE_DTYPE)
    else:
        v = v.astype(COMPUTE_DTYPE)

    # In-VMEM zero halo on D/H (W halo lives inside the Toeplitz weights).
    zh = jnp.zeros((D, 1, WC), COMPUTE_DTYPE)
    vh = jnp.concatenate([zh, v, zh], axis=1)           # (D, H+2, WC)
    zd = jnp.zeros((1, H + 2, WC), COMPUTE_DTYPE)
    vp = jnp.concatenate([zd, vh, zd], axis=0)          # (D+2, H+2, WC)

    # Fold the 3 kh taps into the K axis: only 3 sublane-shifted copies,
    # reused across kd (kd is a free leading-axis offset).
    xcat = jnp.concatenate(
        [vp[:, 0:H, :], vp[:, 1:H + 1, :], vp[:, 2:H + 2, :]],
        axis=-1)                                        # (D+2, H, 3*WC)

    # 3 wide-K matmuls: (D*H, 3*WC) x (3*WC, WC), f32 accumulation.
    acc = jnp.zeros((D * H, WC), jnp.float32)
    for kd in range(3):
        lhs = xcat[kd:kd + D].reshape(D * H, 3 * WC)
        acc = acc + jnp.dot(lhs, w_ref[kd],
                            preferred_element_type=jnp.float32)

    y_ref[0] = acc.reshape(D, H, WC).astype(y_ref.dtype)

    # One-pass BN partial statistics (per block, reduced over rows), emitted
    # as a single lane-dense row.
    ssum = jnp.sum(acc, axis=0, keepdims=True)          # (1, WC)
    ssq = jnp.sum(acc * acc, axis=0, keepdims=True)     # (1, WC)
    stats_ref[0] = jnp.concatenate([ssum, ssq], axis=-1)


def _finalize_kernel(y2_ref, xres_ref, sc_ref, sh_ref, alpha_ref, out_ref):
    """out = prelu(bn2(y2) + residual)  — all lane-dense elementwise."""
    _, _, _, WC = y2_ref.shape
    alpha = alpha_ref[0]
    sc = sc_ref[...].reshape(1, 1, WC)
    sh = sh_ref[...].reshape(1, 1, WC)
    y = y2_ref[0].astype(jnp.float32) * sc + sh + xres_ref[0]
    out_ref[0] = jnp.where(y >= 0.0, y, alpha * y)


# --------------------------------------------------------------------------
# Wrapper-side helpers
# --------------------------------------------------------------------------
def _build_toeplitz(w, W):
    """PyTorch Conv3d weight (Cout, Cin, 3, 3, 3) -> (3, 3*W*Cin, W*Cout)
    block-Toeplitz over W (kw taps + W zero padding folded in), with the kh
    taps concatenated along the K axis."""
    C = w.shape[1]
    wt = jnp.transpose(w, (2, 3, 4, 1, 0)).astype(jnp.float32)  # (kd,kh,kw,ci,co)
    wi = jnp.arange(W)[:, None]
    wo = jnp.arange(W)[None, :]
    off = wi - wo + 1                                            # kw index
    valid = ((off >= 0) & (off <= 2)).astype(jnp.float32)[..., None, None]
    off_c = jnp.clip(off, 0, 2)
    mats = []
    for kd in range(3):
        for kh in range(3):
            taps = wt[kd, kh][off_c] * valid                     # (W, W, Ci, Co)
            mats.append(jnp.transpose(taps, (0, 2, 1, 3)).reshape(W * C, W * C))
    t9 = jnp.stack(mats)                                         # (9, WC, WC)
    return t9.reshape(3, 3 * W * C, W * C)                       # kh folded into K


def _bn_affine(stats, gamma, beta, W, C, count):
    """Fold per-block partial stats into per-channel BN scale/shift."""
    s = stats.reshape(stats.shape[0], 2 * W * C).sum(axis=0)
    s = s.reshape(2, W, C).sum(axis=1)                           # (2, C)
    mean = s[0] / count
    var = jnp.maximum(s[1] / count - mean * mean, 0.0)           # biased var
    # TODO(synk): E[x^2]-E[x]^2 in f32 loses precision for very large counts;
    # fine at these sizes.
    scale = gamma * jax.lax.rsqrt(var + EPS)
    shift = beta - mean * scale
    return scale, shift


def _conv_pass(x, T, in_scale, in_shift, alpha_arr, *, apply_input_act):
    N, D, H, WC = x.shape
    kernel = functools.partial(_conv_bn_stats_kernel,
                               apply_input_act=apply_input_act)
    return pl.pallas_call(
        kernel,
        out_shape=(jax.ShapeDtypeStruct((N, D, H, WC), COMPUTE_DTYPE),
                   jax.ShapeDtypeStruct((N, 1, 2 * WC), jnp.float32)),
        grid=(N,),
        in_specs=[
            pl.BlockSpec((1, D, H, WC), lambda nb: (nb, 0, 0, 0)),
            pl.BlockSpec((3, 3 * WC, WC), lambda nb: (0, 0, 0)),
            pl.BlockSpec((1, WC), lambda nb: (0, 0)),
            pl.BlockSpec((1, WC), lambda nb: (0, 0)),
            pl.BlockSpec(memory_space=pltpu.MemorySpace.SMEM),
        ],
        out_specs=(
            pl.BlockSpec((1, D, H, WC), lambda nb: (nb, 0, 0, 0)),
            pl.BlockSpec((1, 1, 2 * WC), lambda nb: (nb, 0, 0)),
        ),
        compiler_params=pltpu.CompilerParams(
            dimension_semantics=("parallel",)),
    )(x, T, in_scale, in_shift, alpha_arr)


def _finalize_pass(y2, x_f, sc, sh, alpha_arr):
    N, D, H, WC = y2.shape
    return pl.pallas_call(
        _finalize_kernel,
        out_shape=jax.ShapeDtypeStruct((N, D, H, WC), jnp.float32),
        grid=(N,),
        in_specs=[
            pl.BlockSpec((1, D, H, WC), lambda nb: (nb, 0, 0, 0)),
            pl.BlockSpec((1, D, H, WC), lambda nb: (nb, 0, 0, 0)),
            pl.BlockSpec((1, WC), lambda nb: (0, 0)),
            pl.BlockSpec((1, WC), lambda nb: (0, 0)),
            pl.BlockSpec(memory_space=pltpu.MemorySpace.SMEM),
        ],
        out_specs=pl.BlockSpec((1, D, H, WC), lambda nb: (nb, 0, 0, 0)),
        compiler_params=pltpu.CompilerParams(
            dimension_semantics=("parallel",)),
    )(y2, x_f, sc, sh, alpha_arr)


# --------------------------------------------------------------------------
# Public forward
# --------------------------------------------------------------------------
def resnet_block_3d(x_ncdhw, params):
    """x_ncdhw: (N, C, D, H, W) float32 (PyTorch layout). Returns NCDHW."""
    w1, b1, w2, b2, gamma, beta, alpha = params
    # Conv biases are exactly cancelled by training-mode BN:
    #   (y + b) - mean(y + b) == y - mean(y)   -> drop them.
    del b1, b2
    N, C, D, H, W = x_ncdhw.shape
    WC = W * C
    count = N * D * H * W

    gamma = gamma.astype(jnp.float32)
    beta = beta.astype(jnp.float32)
    alpha_arr = jnp.asarray(alpha, jnp.float32).reshape(1)

    # channels-last, W*C flattened onto the lane axis (single fused XLA pass)
    x_f = jnp.transpose(x_ncdhw, (0, 2, 3, 4, 1)).astype(jnp.float32)
    x_f = x_f.reshape(N, D, H, WC)

    T1 = _build_toeplitz(w1, W).astype(COMPUTE_DTYPE)
    T2 = _build_toeplitz(w2, W).astype(COMPUTE_DTYPE)
    zeros_lane = jnp.zeros((1, WC), jnp.float32)

    # conv1 -> (y1 bf16, partial stats1); halo built in VMEM, cast in kernel
    y1, stats1 = _conv_pass(x_f, T1, zeros_lane, zeros_lane, alpha_arr,
                            apply_input_act=False)
    sc1, sh1 = _bn_affine(stats1, gamma, beta, W, C, count)

    # (bn1 + prelu fused into the read) -> conv2 -> (y2 bf16, partial stats2)
    y2, stats2 = _conv_pass(y1, T2,
                            jnp.tile(sc1, W).reshape(1, WC),
                            jnp.tile(sh1, W).reshape(1, WC),
                            alpha_arr, apply_input_act=True)
    sc2, sh2 = _bn_affine(stats2, gamma, beta, W, C, count)

    # bn2 + residual (f32) + prelu
    out_f = _finalize_pass(y2, x_f,
                           jnp.tile(sc2, W).reshape(1, WC),
                           jnp.tile(sh2, W).reshape(1, WC),
                           alpha_arr)

    out = out_f.reshape(N, D, H, W, C)
    return jnp.transpose(out, (0, 4, 1, 2, 3))


# --------------------------------------------------------------------------
# Pure-JAX reference of the PyTorch forward (NCDHW), biases included
# --------------------------------------------------------------------------
def _ref_forward(x, params):
    w1, b1, w2, b2, gamma, beta, alpha = params

    def conv(y, w, b):
        z = jax.lax.conv_general_dilated(
            y, w, window_strides=(1, 1, 1),
            padding=((1, 1), (1, 1), (1, 1)),
            dimension_numbers=('NCDHW', 'OIDHW', 'NCDHW'))
        return z + b[None, :, None, None, None]

    def bn(y):
        mean = jnp.mean(y, axis=(0, 2, 3, 4), keepdims=True)
        var = jnp.mean((y - mean) ** 2, axis=(0, 2, 3, 4), keepdims=True)
        g = gamma[None, :, None, None, None]
        bb = beta[None, :, None, None, None]
        return (y - mean) * jax.lax.rsqrt(var + EPS) * g + bb

    def prelu(y):
        return jnp.where(y >= 0, y, alpha * y)

    h = prelu(bn(conv(x, w1, b1)))
    out = bn(conv(h, w2, b2)) + x
    return prelu(out)


if __name__ == "__main__":
    # small shapes; num_filter = 8, W chosen so W*C = 128 (lane-dense)
    N, C, D, H, W = 2, 8, 8, 8, 16
    key = jax.random.PRNGKey(0)
    kx, kw1, kb1, kw2, kb2 = jax.random.split(key, 5)

    fan_in = C * 3 * 3 * 3
    bound = 1.0 / math.sqrt(fan_in)
    w1 = jax.random.uniform(kw1, (C, C, 3, 3, 3), jnp.float32, -bound, bound)
    b1 = jax.random.uniform(kb1, (C,), jnp.float32, -bound, bound)
    w2 = jax.random.uniform(kw2, (C, C, 3, 3, 3), jnp.float32, -bound, bound)
    b2 = jax.random.uniform(kb2, (C,), jnp.float32, -bound, bound)
    gamma = jnp.ones((C,), jnp.float32)     # BatchNorm default affine init
    beta = jnp.zeros((C,), jnp.float32)
    alpha = jnp.float32(0.25)               # PReLU default slope
    params = (w1, b1, w2, b2, gamma, beta, alpha)

    x = jax.random.normal(kx, (N, C, D, H, W), jnp.float32)

    fwd = jax.jit(resnet_block_3d)
    out = jax.block_until_ready(fwd(x, params))
    ref = jax.block_until_ready(_ref_forward(x, params))

    assert out.shape == x.shape, (out.shape, x.shape)
    max_err = float(jnp.max(jnp.abs(out - ref)))
    # bf16 matmul inputs + bf16 inter-conv intermediates (f32 accumulation,
    # f32 residual/output): a few e-2 worst-case absolute deviation.
    assert max_err < 5e-2, f"mismatch vs reference, max abs err {max_err}"
    print("KERNEL_OK")
</pallas_src>

<mosaic_0001>
module attributes {stable_mosaic.version = 11 : i64} {
  func.func @_conv_bn_stats_kernel(%arg0: i32, %arg1: memref<1x8x8x128xf32, #tpu.memory_space<vmem>>, %arg2: memref<3x384x128xbf16, #tpu.memory_space<vmem>>, %arg3: memref<1x128xf32, #tpu.memory_space<vmem>>, %arg4: memref<1x128xf32, #tpu.memory_space<vmem>>, %arg5: memref<1xf32, #tpu.memory_space<smem>>, %arg6: memref<1x8x8x128xbf16, #tpu.memory_space<vmem>>, %arg7: memref<1x1x256xf32, #tpu.memory_space<vmem>>) attributes {dimension_semantics = [#tpu.dimension_semantics<parallel>], iteration_bounds = array<i64: 2>, scalar_prefetch = 0 : i64, scratch_operands = 0 : i64, tpu.core_type = #tpu.core_type<tc>, window_params = [{transform_indices = @transform_0, window_bounds = array<i64: 1, 8, 8, 128>}, {pipeline_mode = #tpu.pipeline_mode<synchronous>, transform_indices = @transform_1, window_bounds = array<i64: 3, 384, 128>}, {pipeline_mode = #tpu.pipeline_mode<synchronous>, transform_indices = @transform_2, window_bounds = array<i64: 1, 128>}, {pipeline_mode = #tpu.pipeline_mode<synchronous>, transform_indices = @transform_3, window_bounds = array<i64: 1, 128>}, {transform_indices = @transform_4, window_bounds = array<i64: 1>}, {transform_indices = @transform_5, window_bounds = array<i64: 1, 8, 8, 128>}, {transform_indices = @transform_6, window_bounds = array<i64: 1, 1, 256>}]} {
    %c0 = arith.constant 0 : index
    %c0_0 = arith.constant 0 : index
    %c0_1 = arith.constant 0 : index
    %c0_2 = arith.constant 0 : index
    %0 = vector.load %arg1[%c0, %c0_0, %c0_1, %c0_2] : memref<1x8x8x128xf32, #tpu.memory_space<vmem>>, vector<1x8x8x128xf32>
    %1 = vector.shape_cast %0 : vector<1x8x8x128xf32> to vector<8x8x128xf32>
    %2 = arith.truncf %1 : vector<8x8x128xf32> to vector<8x8x128xbf16>
    %cst = arith.constant 0.000000e+00 : bf16
    %3 = vector.broadcast %cst : bf16 to vector<8x1x128xbf16>
    %4 = tpu.concatenate %3, %2, %3 in 1 : vector<8x1x128xbf16>, vector<8x8x128xbf16>, vector<8x1x128xbf16> -> vector<8x10x128xbf16>
    %cst_3 = arith.constant 0.000000e+00 : bf16
    %5 = vector.broadcast %cst_3 : bf16 to vector<1x10x128xbf16>
    %6 = tpu.concatenate %5, %4, %5 in 0 : vector<1x10x128xbf16>, vector<8x10x128xbf16>, vector<1x10x128xbf16> -> vector<10x10x128xbf16>
    %7 = vector.extract_strided_slice %6 {offsets = [0, 0, 0], sizes = [10, 8, 128], strides = [1, 1, 1]} : vector<10x10x128xbf16> to vector<10x8x128xbf16>
    %8 = vector.extract_strided_slice %6 {offsets = [0, 1, 0], sizes = [10, 8, 128], strides = [1, 1, 1]} : vector<10x10x128xbf16> to vector<10x8x128xbf16>
    %9 = vector.extract_strided_slice %6 {offsets = [0, 2, 0], sizes = [10, 8, 128], strides = [1, 1, 1]} : vector<10x10x128xbf16> to vector<10x8x128xbf16>
    %10 = tpu.concatenate %7, %8, %9 in 2 : vector<10x8x128xbf16>, vector<10x8x128xbf16>, vector<10x8x128xbf16> -> vector<10x8x384xbf16>
    %cst_4 = arith.constant 0.000000e+00 : f32
    %11 = vector.broadcast %cst_4 : f32 to vector<64x128xf32>
    %12 = vector.extract_strided_slice %10 {offsets = [0, 0, 0], sizes = [8, 8, 384], strides = [1, 1, 1]} : vector<10x8x384xbf16> to vector<8x8x384xbf16>
    %13 = vector.shape_cast %12 : vector<8x8x384xbf16> to vector<64x384xbf16>
    %c0_5 = arith.constant 0 : index
    %c0_6 = arith.constant 0 : index
    %c0_7 = arith.constant 0 : index
    %14 = vector.load %arg2[%c0_5, %c0_6, %c0_7] : memref<3x384x128xbf16, #tpu.memory_space<vmem>>, vector<1x384x128xbf16>
    %15 = vector.shape_cast %14 : vector<1x384x128xbf16> to vector<384x128xbf16>
    %cst_8 = arith.constant dense<0.000000e+00> : vector<64x128xf32>
    %16 = tpu.matmul %13, %15, %cst_8 {dimension_numbers = #tpu.dot_dimension_numbers<[1], [0], [0], [1], [0, 0, 1, 1], [], []>} : vector<64x384xbf16>, vector<384x128xbf16>, vector<64x128xf32> -> vector<64x128xf32>
    %17 = arith.addf %11, %16 : vector<64x128xf32>
    %18 = vector.extract_strided_slice %10 {offsets = [1, 0, 0], sizes = [8, 8, 384], strides = [1, 1, 1]} : vector<10x8x384xbf16> to vector<8x8x384xbf16>
    %19 = vector.shape_cast %18 : vector<8x8x384xbf16> to vector<64x384xbf16>
    %c1 = arith.constant 1 : index
    %c0_9 = arith.constant 0 : index
    %c0_10 = arith.constant 0 : index
    %20 = vector.load %arg2[%c1, %c0_9, %c0_10] : memref<3x384x128xbf16, #tpu.memory_space<vmem>>, vector<1x384x128xbf16>
    %21 = vector.shape_cast %20 : vector<1x384x128xbf16> to vector<384x128xbf16>
    %cst_11 = arith.constant dense<0.000000e+00> : vector<64x128xf32>
    %22 = tpu.matmul %19, %21, %cst_11 {dimension_numbers = #tpu.dot_dimension_numbers<[1], [0], [0], [1], [0, 0, 1, 1], [], []>} : vector<64x384xbf16>, vector<384x128xbf16>, vector<64x128xf32> -> vector<64x128xf32>
    %23 = arith.addf %17, %22 : vector<64x128xf32>
    %24 = vector.extract_strided_slice %10 {offsets = [2, 0, 0], sizes = [8, 8, 384], strides = [1, 1, 1]} : vector<10x8x384xbf16> to vector<8x8x384xbf16>
    %25 = vector.shape_cast %24 : vector<8x8x384xbf16> to vector<64x384xbf16>
    %c2 = arith.constant 2 : index
    %c0_12 = arith.constant 0 : index
    %c0_13 = arith.constant 0 : index
    %26 = vector.load %arg2[%c2, %c0_12, %c0_13] : memref<3x384x128xbf16, #tpu.memory_space<vmem>>, vector<1x384x128xbf16>
    %27 = vector.shape_cast %26 : vector<1x384x128xbf16> to vector<384x128xbf16>
    %cst_14 = arith.constant dense<0.000000e+00> : vector<64x128xf32>
    %28 = tpu.matmul %25, %27, %cst_14 {dimension_numbers = #tpu.dot_dimension_numbers<[1], [0], [0], [1], [0, 0, 1, 1], [], []>} : vector<64x384xbf16>, vector<384x128xbf16>, vector<64x128xf32> -> vector<64x128xf32>
    %29 = arith.addf %23, %28 : vector<64x128xf32>
    %30 = vector.shape_cast %29 : vector<64x128xf32> to vector<8x8x128xf32>
    %31 = arith.truncf %30 : vector<8x8x128xf32> to vector<8x8x128xbf16>
    %c0_15 = arith.constant 0 : index
    %c0_16 = arith.constant 0 : index
    %c0_17 = arith.constant 0 : index
    %c0_18 = arith.constant 0 : index
    %32 = vector.load %arg6[%c0_15, %c0_16, %c0_17, %c0_18] : memref<1x8x8x128xbf16, #tpu.memory_space<vmem>>, vector<1x8x8x128xbf16>
    %33 = vector.shape_cast %32 : vector<1x8x8x128xbf16> to vector<8x8x128xbf16>
    %34 = vector.shape_cast %31 : vector<8x8x128xbf16> to vector<1x8x8x128xbf16>
    tpu.vector_store %arg6[%c0_15, %c0_16, %c0_17, %c0_18], %34 {strides = array<i32>} : memref<1x8x8x128xbf16, #tpu.memory_space<vmem>>, vector<1x8x8x128xbf16>,
    %cst_19 = arith.constant dense<0.000000e+00> : vector<128xf32>
    %35 = vector.multi_reduction <add>, %29, %cst_19 [0] : vector<64x128xf32> to vector<128xf32>
    %36 = vector.shape_cast %35 : vector<128xf32> to vector<1x128xf32>
    %37 = arith.mulf %29, %29 : vector<64x128xf32>
    %cst_20 = arith.constant dense<0.000000e+00> : vector<128xf32>
    %38 = vector.multi_reduction <add>, %37, %cst_20 [0] : vector<64x128xf32> to vector<128xf32>
    %39 = vector.shape_cast %38 : vector<128xf32> to vector<1x128xf32>
    %40 = tpu.concatenate %36, %39 in 1 : vector<1x128xf32>, vector<1x128xf32> -> vector<1x256xf32>
    %c0_21 = arith.constant 0 : index
    %c0_22 = arith.constant 0 : index
    %c0_23 = arith.constant 0 : index
    %41 = vector.load %arg7[%c0_21, %c0_22, %c0_23] : memref<1x1x256xf32, #tpu.memory_space<vmem>>, vector<1x1x256xf32>
    %42 = vector.shape_cast %41 : vector<1x1x256xf32> to vector<1x256xf32>
    %43 = vector.shape_cast %40 : vector<1x256xf32> to vector<1x1x256xf32>
    tpu.vector_store %arg7[%c0_21, %c0_22, %c0_23], %43 {strides = array<i32>} : memref<1x1x256xf32, #tpu.memory_space<vmem>>, vector<1x1x256xf32>,
    return
  }
  func.func @transform_0(%arg0: i32) -> (i32, i32, i32, i32) {
    %c0_i32 = arith.constant 0 : i32
    %c0_i32_0 = arith.constant 0 : i32
    %c0_i32_1 = arith.constant 0 : i32
    %c0_i32_2 = arith.constant 0 : i32
    return %arg0, %c0_i32, %c0_i32_0, %c0_i32_1 : i32, i32, i32, i32
  }
  func.func @transform_1(%arg0: i32) -> (i32, i32, i32) {
    %c0_i32 = arith.constant 0 : i32
    %c0_i32_0 = arith.constant 0 : i32
    %c0_i32_1 = arith.constant 0 : i32
    %c0_i32_2 = arith.constant 0 : i32
    return %c0_i32, %c0_i32_0, %c0_i32_1 : i32, i32, i32
  }
  func.func @transform_2(%arg0: i32) -> (i32, i32) {
    %c0_i32 = arith.constant 0 : i32
    %c0_i32_0 = arith.constant 0 : i32
    %c0_i32_1 = arith.constant 0 : i32
    return %c0_i32, %c0_i32_0 : i32, i32
  }
  func.func @transform_3(%arg0: i32) -> (i32, i32) {
    %c0_i32 = arith.constant 0 : i32
    %c0_i32_0 = arith.constant 0 : i32
    %c0_i32_1 = arith.constant 0 : i32
    return %c0_i32, %c0_i32_0 : i32, i32
  }
  func.func @transform_4(%arg0: i32) -> i32 {
    %c0_i32 = arith.constant 0 : i32
    %c0_i32_0 = arith.constant 0 : i32
    return %c0_i32 : i32
  }
  func.func @transform_5(%arg0: i32) -> (i32, i32, i32, i32) {
    %c0_i32 = arith.constant 0 : i32
    %c0_i32_0 = arith.constant 0 : i32
    %c0_i32_1 = arith.constant 0 : i32
    %c0_i32_2 = arith.constant 0 : i32
    return %arg0, %c0_i32, %c0_i32_0, %c0_i32_1 : i32, i32, i32, i32
  }
  func.func @transform_6(%arg0: i32) -> (i32, i32, i32) {
    %c0_i32 = arith.constant 0 : i32
    %c0_i32_0 = arith.constant 0 : i32
    %c0_i32_1 = arith.constant 0 : i32
    return %arg0, %c0_i32, %c0_i32_0 : i32, i32, i32
  }
}

module attributes {stable_mosaic.version = 11 : i64} {
  func.func @_conv_bn_stats_kernel(%arg0: i32, %arg1: memref<1x8x8x128xbf16, #tpu.memory_space<vmem>>, %arg2: memref<3x384x128xbf16, #tpu.memory_space<vmem>>, %arg3: memref<1x128xf32, #tpu.memory_space<vmem>>, %arg4: memref<1x128xf32, #tpu.memory_space<vmem>>, %arg5: memref<1xf32, #tpu.memory_space<smem>>, %arg6: memref<1x8x8x128xbf16, #tpu.memory_space<vmem>>, %arg7: memref<1x1x256xf32, #tpu.memory_space<vmem>>) attributes {dimension_semantics = [#tpu.dimension_semantics<parallel>], iteration_bounds = array<i64: 2>, scalar_prefetch = 0 : i64, scratch_operands = 0 : i64, tpu.core_type = #tpu.core_type<tc>, window_params = [{transform_indices = @transform_0, window_bounds = array<i64: 1, 8, 8, 128>}, {pipeline_mode = #tpu.pipeline_mode<synchronous>, transform_indices = @transform_1, window_bounds = array<i64: 3, 384, 128>}, {pipeline_mode = #tpu.pipeline_mode<synchronous>, transform_indices = @transform_2, window_bounds = array<i64: 1, 128>}, {pipeline_mode = #tpu.pipeline_mode<synchronous>, transform_indices = @transform_3, window_bounds = array<i64: 1, 128>}, {transform_indices = @transform_4, window_bounds = array<i64: 1>}, {transform_indices = @transform_5, window_bounds = array<i64: 1, 8, 8, 128>}, {transform_indices = @transform_6, window_bounds = array<i64: 1, 1, 256>}]} {
    %c0 = arith.constant 0 : index
    %c0_0 = arith.constant 0 : index
    %c0_1 = arith.constant 0 : index
    %c0_2 = arith.constant 0 : index
    %0 = vector.load %arg1[%c0, %c0_0, %c0_1, %c0_2] : memref<1x8x8x128xbf16, #tpu.memory_space<vmem>>, vector<1x8x8x128xbf16>
    %1 = vector.shape_cast %0 : vector<1x8x8x128xbf16> to vector<8x8x128xbf16>
    %c0_3 = arith.constant 0 : index
    %2 = memref.load %arg5[%c0_3] : memref<1xf32, #tpu.memory_space<smem>>
    %c0_4 = arith.constant 0 : index
    %c0_5 = arith.constant 0 : index
    %3 = vector.load %arg3[%c0_4, %c0_5] : memref<1x128xf32, #tpu.memory_space<vmem>>, vector<1x128xf32>
    %4 = vector.shape_cast %3 : vector<1x128xf32> to vector<1x1x128xf32>
    %c0_6 = arith.constant 0 : index
    %c0_7 = arith.constant 0 : index
    %5 = vector.load %arg4[%c0_6, %c0_7] : memref<1x128xf32, #tpu.memory_space<vmem>>, vector<1x128xf32>
    %6 = vector.shape_cast %5 : vector<1x128xf32> to vector<1x1x128xf32>
    %7 = arith.extf %1 : vector<8x8x128xbf16> to vector<8x8x128xf32>
    %8 = vector.broadcast %4 : vector<1x1x128xf32> to vector<8x8x128xf32>
    %9 = arith.mulf %7, %8 : vector<8x8x128xf32>
    %10 = vector.broadcast %6 : vector<1x1x128xf32> to vector<8x8x128xf32>
    %11 = arith.addf %9, %10 : vector<8x8x128xf32>
    %cst = arith.constant 0.000000e+00 : f32
    %12 = vector.broadcast %cst : f32 to vector<8x8x128xf32>
    %13 = arith.cmpf oge, %11, %12 : vector<8x8x128xf32>
    %14 = vector.broadcast %2 : f32 to vector<8x8x128xf32>
    %15 = arith.mulf %14, %11 : vector<8x8x128xf32>
    %16 = arith.select %13, %11, %15 : vector<8x8x128xi1>, vector<8x8x128xf32>
    %17 = arith.truncf %16 : vector<8x8x128xf32> to vector<8x8x128xbf16>
    %cst_8 = arith.constant 0.000000e+00 : bf16
    %18 = vector.broadcast %cst_8 : bf16 to vector<8x1x128xbf16>
    %19 = tpu.concatenate %18, %17, %18 in 1 : vector<8x1x128xbf16>, vector<8x8x128xbf16>, vector<8x1x128xbf16> -> vector<8x10x128xbf16>
    %cst_9 = arith.constant 0.000000e+00 : bf16
    %20 = vector.broadcast %cst_9 : bf16 to vector<1x10x128xbf16>
    %21 = tpu.concatenate %20, %19, %20 in 0 : vector<1x10x128xbf16>, vector<8x10x128xbf16>, vector<1x10x128xbf16> -> vector<10x10x128xbf16>
    %22 = vector.extract_strided_slice %21 {offsets = [0, 0, 0], sizes = [10, 8, 128], strides = [1, 1, 1]} : vector<10x10x128xbf16> to vector<10x8x128xbf16>
    %23 = vector.extract_strided_slice %21 {offsets = [0, 1, 0], sizes = [10, 8, 128], strides = [1, 1, 1]} : vector<10x10x128xbf16> to vector<10x8x128xbf16>
    %24 = vector.extract_strided_slice %21 {offsets = [0, 2, 0], sizes = [10, 8, 128], strides = [1, 1, 1]} : vector<10x10x128xbf16> to vector<10x8x128xbf16>
    %25 = tpu.concatenate %22, %23, %24 in 2 : vector<10x8x128xbf16>, vector<10x8x128xbf16>, vector<10x8x128xbf16> -> vector<10x8x384xbf16>
    %cst_10 = arith.constant 0.000000e+00 : f32
    %26 = vector.broadcast %cst_10 : f32 to vector<64x128xf32>
    %27 = vector.extract_strided_slice %25 {offsets = [0, 0, 0], sizes = [8, 8, 384], strides = [1, 1, 1]} : vector<10x8x384xbf16> to vector<8x8x384xbf16>
    %28 = vector.shape_cast %27 : vector<8x8x384xbf16> to vector<64x384xbf16>
    %c0_11 = arith.constant 0 : index
    %c0_12 = arith.constant 0 : index
    %c0_13 = arith.constant 0 : index
    %29 = vector.load %arg2[%c0_11, %c0_12, %c0_13] : memref<3x384x128xbf16, #tpu.memory_space<vmem>>, vector<1x384x128xbf16>
    %30 = vector.shape_cast %29 : vector<1x384x128xbf16> to vector<384x128xbf16>
    %cst_14 = arith.constant dense<0.000000e+00> : vector<64x128xf32>
    %31 = tpu.matmul %28, %30, %cst_14 {dimension_numbers = #tpu.dot_dimension_numbers<[1], [0], [0], [1], [0, 0, 1, 1], [], []>} : vector<64x384xbf16>, vector<384x128xbf16>, vector<64x128xf32> -> vector<64x128xf32>
    %32 = arith.addf %26, %31 : vector<64x128xf32>
    %33 = vector.extract_strided_slice %25 {offsets = [1, 0, 0], sizes = [8, 8, 384], strides = [1, 1, 1]} : vector<10x8x384xbf16> to vector<8x8x384xbf16>
    %34 = vector.shape_cast %33 : vector<8x8x384xbf16> to vector<64x384xbf16>
    %c1 = arith.constant 1 : index
    %c0_15 = arith.constant 0 : index
    %c0_16 = arith.constant 0 : index
    %35 = vector.load %arg2[%c1, %c0_15, %c0_16] : memref<3x384x128xbf16, #tpu.memory_space<vmem>>, vector<1x384x128xbf16>
    %36 = vector.shape_cast %35 : vector<1x384x128xbf16> to vector<384x128xbf16>
    %cst_17 = arith.constant dense<0.000000e+00> : vector<64x128xf32>
    %37 = tpu.matmul %34, %36, %cst_17 {dimension_numbers = #tpu.dot_dimension_numbers<[1], [0], [0], [1], [0, 0, 1, 1], [], []>} : vector<64x384xbf16>, vector<384x128xbf16>, vector<64x128xf32> -> vector<64x128xf32>
    %38 = arith.addf %32, %37 : vector<64x128xf32>
    %39 = vector.extract_strided_slice %25 {offsets = [2, 0, 0], sizes = [8, 8, 384], strides = [1, 1, 1]} : vector<10x8x384xbf16> to vector<8x8x384xbf16>
    %40 = vector.shape_cast %39 : vector<8x8x384xbf16> to vector<64x384xbf16>
    %c2 = arith.constant 2 : index
    %c0_18 = arith.constant 0 : index
    %c0_19 = arith.constant 0 : index
    %41 = vector.load %arg2[%c2, %c0_18, %c0_19] : memref<3x384x128xbf16, #tpu.memory_space<vmem>>, vector<1x384x128xbf16>
    %42 = vector.shape_cast %41 : vector<1x384x128xbf16> to vector<384x128xbf16>
    %cst_20 = arith.constant dense<0.000000e+00> : vector<64x128xf32>
    %43 = tpu.matmul %40, %42, %cst_20 {dimension_numbers = #tpu.dot_dimension_numbers<[1], [0], [0], [1], [0, 0, 1, 1], [], []>} : vector<64x384xbf16>, vector<384x128xbf16>, vector<64x128xf32> -> vector<64x128xf32>
    %44 = arith.addf %38, %43 : vector<64x128xf32>
    %45 = vector.shape_cast %44 : vector<64x128xf32> to vector<8x8x128xf32>
    %46 = arith.truncf %45 : vector<8x8x128xf32> to vector<8x8x128xbf16>
    %c0_21 = arith.constant 0 : index
    %c0_22 = arith.constant 0 : index
    %c0_23 = arith.constant 0 : index
    %c0_24 = arith.constant 0 : index
    %47 = vector.load %arg6[%c0_21, %c0_22, %c0_23, %c0_24] : memref<1x8x8x128xbf16, #tpu.memory_space<vmem>>, vector<1x8x8x128xbf16>
    %48 = vector.shape_cast %47 : vector<1x8x8x128xbf16> to vector<8x8x128xbf16>
    %49 = vector.shape_cast %46 : vector<8x8x128xbf16> to vector<1x8x8x128xbf16>
    tpu.vector_store %arg6[%c0_21, %c0_22, %c0_23, %c0_24], %49 {strides = array<i32>} : memref<1x8x8x128xbf16, #tpu.memory_space<vmem>>, vector<1x8x8x128xbf16>,
    %cst_25 = arith.constant dense<0.000000e+00> : vector<128xf32>
    %50 = vector.multi_reduction <add>, %44, %cst_25 [0] : vector<64x128xf32> to vector<128xf32>
    %51 = vector.shape_cast %50 : vector<128xf32> to vector<1x128xf32>
    %52 = arith.mulf %44, %44 : vector<64x128xf32>
    %cst_26 = arith.constant dense<0.000000e+00> : vector<128xf32>
    %53 = vector.multi_reduction <add>, %52, %cst_26 [0] : vector<64x128xf32> to vector<128xf32>
    %54 = vector.shape_cast %53 : vector<128xf32> to vector<1x128xf32>
    %55 = tpu.concatenate %51, %54 in 1 : vector<1x128xf32>, vector<1x128xf32> -> vector<1x256xf32>
    %c0_27 = arith.constant 0 : index
    %c0_28 = arith.constant 0 : index
    %c0_29 = arith.constant 0 : index
    %56 = vector.load %arg7[%c0_27, %c0_28, %c0_29] : memref<1x1x256xf32, #tpu.memory_space<vmem>>, vector<1x1x256xf32>
    %57 = vector.shape_cast %56 : vector<1x1x256xf32> to vector<1x256xf32>
    %58 = vector.shape_cast %55 : vector<1x256xf32> to vector<1x1x256xf32>
    tpu.vector_store %arg7[%c0_27, %c0_28, %c0_29], %58 {strides = array<i32>} : memref<1x1x256xf32, #tpu.memory_space<vmem>>, vector<1x1x256xf32>,
    return
  }
  func.func @transform_0(%arg0: i32) -> (i32, i32, i32, i32) {
    %c0_i32 = arith.constant 0 : i32
    %c0_i32_0 = arith.constant 0 : i32
    %c0_i32_1 = arith.constant 0 : i32
    %c0_i32_2 = arith.constant 0 : i32
    return %arg0, %c0_i32, %c0_i32_0, %c0_i32_1 : i32, i32, i32, i32
  }
  func.func @transform_1(%arg0: i32) -> (i32, i32, i32) {
    %c0_i32 = arith.constant 0 : i32
    %c0_i32_0 = arith.constant 0 : i32
    %c0_i32_1 = arith.constant 0 : i32
    %c0_i32_2 = arith.constant 0 : i32
    return %c0_i32, %c0_i32_0, %c0_i32_1 : i32, i32, i32
  }
  func.func @transform_2(%arg0: i32) -> (i32, i32) {
    %c0_i32 = arith.constant 0 : i32
    %c0_i32_0 = arith.constant 0 : i32
    %c0_i32_1 = arith.constant 0 : i32
    return %c0_i32, %c0_i32_0 : i32, i32
  }
  func.func @transform_3(%arg0: i32) -> (i32, i32) {
    %c0_i32 = arith.constant 0 : i32
    %c0_i32_0 = arith.constant 0 : i32
    %c0_i32_1 = arith.constant 0 : i32
    return %c0_i32, %c0_i32_0 : i32, i32
  }
  func.func @transform_4(%arg0: i32) -> i32 {
    %c0_i32 = arith.constant 0 : i32
    %c0_i32_0 = arith.constant 0 : i32
    return %c0_i32 : i32
  }
  func.func @transform_5(%arg0: i32) -> (i32, i32, i32, i32) {
    %c0_i32 = arith.constant 0 : i32
    %c0_i32_0 = arith.constant 0 : i32
    %c0_i32_1 = arith.constant 0 : i32
    %c0_i32_2 = arith.constant 0 : i32
    return %arg0, %c0_i32, %c0_i32_0, %c0_i32_1 : i32, i32, i32, i32
  }
  func.func @transform_6(%arg0: i32) -> (i32, i32, i32) {
    %c0_i32 = arith.constant 0 : i32
    %c0_i32_0 = arith.constant 0 : i32
    %c0_i32_1 = arith.constant 0 : i32
    return %arg0, %c0_i32, %c0_i32_0 : i32, i32, i32
  }
}

module attributes {stable_mosaic.version = 11 : i64} {
  func.func @_finalize_kernel(%arg0: i32, %arg1: memref<1x8x8x128xbf16, #tpu.memory_space<vmem>>, %arg2: memref<1x8x8x128xf32, #tpu.memory_space<vmem>>, %arg3: memref<1x128xf32, #tpu.memory_space<vmem>>, %arg4: memref<1x128xf32, #tpu.memory_space<vmem>>, %arg5: memref<1xf32, #tpu.memory_space<smem>>, %arg6: memref<1x8x8x128xf32, #tpu.memory_space<vmem>>) attributes {dimension_semantics = [#tpu.dimension_semantics<parallel>], iteration_bounds = array<i64: 2>, scalar_prefetch = 0 : i64, scratch_operands = 0 : i64, tpu.core_type = #tpu.core_type<tc>, window_params = [{transform_indices = @transform_0, window_bounds = array<i64: 1, 8, 8, 128>}, {transform_indices = @transform_1, window_bounds = array<i64: 1, 8, 8, 128>}, {pipeline_mode = #tpu.pipeline_mode<synchronous>, transform_indices = @transform_2, window_bounds = array<i64: 1, 128>}, {pipeline_mode = #tpu.pipeline_mode<synchronous>, transform_indices = @transform_3, window_bounds = array<i64: 1, 128>}, {transform_indices = @transform_4, window_bounds = array<i64: 1>}, {transform_indices = @transform_5, window_bounds = array<i64: 1, 8, 8, 128>}]} {
    %c0 = arith.constant 0 : index
    %0 = memref.load %arg5[%c0] : memref<1xf32, #tpu.memory_space<smem>>
    %c0_0 = arith.constant 0 : index
    %c0_1 = arith.constant 0 : index
    %1 = vector.load %arg3[%c0_0, %c0_1] : memref<1x128xf32, #tpu.memory_space<vmem>>, vector<1x128xf32>
    %2 = vector.shape_cast %1 : vector<1x128xf32> to vector<1x1x128xf32>
    %c0_2 = arith.constant 0 : index
    %c0_3 = arith.constant 0 : index
    %3 = vector.load %arg4[%c0_2, %c0_3] : memref<1x128xf32, #tpu.memory_space<vmem>>, vector<1x128xf32>
    %4 = vector.shape_cast %3 : vector<1x128xf32> to vector<1x1x128xf32>
    %c0_4 = arith.constant 0 : index
    %c0_5 = arith.constant 0 : index
    %c0_6 = arith.constant 0 : index
    %c0_7 = arith.constant 0 : index
    %5 = vector.load %arg1[%c0_4, %c0_5, %c0_6, %c0_7] : memref<1x8x8x128xbf16, #tpu.memory_space<vmem>>, vector<1x8x8x128xbf16>
    %6 = vector.shape_cast %5 : vector<1x8x8x128xbf16> to vector<8x8x128xbf16>
    %7 = arith.extf %6 : vector<8x8x128xbf16> to vector<8x8x128xf32>
    %8 = vector.broadcast %2 : vector<1x1x128xf32> to vector<8x8x128xf32>
    %9 = arith.mulf %7, %8 : vector<8x8x128xf32>
    %10 = vector.broadcast %4 : vector<1x1x128xf32> to vector<8x8x128xf32>
    %11 = arith.addf %9, %10 : vector<8x8x128xf32>
    %c0_8 = arith.constant 0 : index
    %c0_9 = arith.constant 0 : index
    %c0_10 = arith.constant 0 : index
    %c0_11 = arith.constant 0 : index
    %12 = vector.load %arg2[%c0_8, %c0_9, %c0_10, %c0_11] : memref<1x8x8x128xf32, #tpu.memory_space<vmem>>, vector<1x8x8x128xf32>
    %13 = vector.shape_cast %12 : vector<1x8x8x128xf32> to vector<8x8x128xf32>
    %14 = arith.addf %11, %13 : vector<8x8x128xf32>
    %cst = arith.constant 0.000000e+00 : f32
    %15 = vector.broadcast %cst : f32 to vector<8x8x128xf32>
    %16 = arith.cmpf oge, %14, %15 : vector<8x8x128xf32>
    %17 = vector.broadcast %0 : f32 to vector<8x8x128xf32>
    %18 = arith.mulf %17, %14 : vector<8x8x128xf32>
    %19 = arith.select %16, %14, %18 : vector<8x8x128xi1>, vector<8x8x128xf32>
    %c0_12 = arith.constant 0 : index
    %c0_13 = arith.constant 0 : index
    %c0_14 = arith.constant 0 : index
    %c0_15 = arith.constant 0 : index
    %20 = vector.load %arg6[%c0_12, %c0_13, %c0_14, %c0_15] : memref<1x8x8x128xf32, #tpu.memory_space<vmem>>, vector<1x8x8x128xf32>
    %21 = vector.shape_cast %20 : vector<1x8x8x128xf32> to vector<8x8x128xf32>
    %22 = vector.shape_cast %19 : vector<8x8x128xf32> to vector<1x8x8x128xf32>
    tpu.vector_store %arg6[%c0_12, %c0_13, %c0_14, %c0_15], %22 {strides = array<i32>} : memref<1x8x8x128xf32, #tpu.memory_space<vmem>>, vector<1x8x8x128xf32>,
    return
  }
  func.func @transform_0(%arg0: i32) -> (i32, i32, i32, i32) {
    %c0_i32 = arith.constant 0 : i32
    %c0_i32_0 = arith.constant 0 : i32
    %c0_i32_1 = arith.constant 0 : i32
    %c0_i32_2 = arith.constant 0 : i32
    return %arg0, %c0_i32, %c0_i32_0, %c0_i32_1 : i32, i32, i32, i32
  }
  func.func @transform_1(%arg0: i32) -> (i32, i32, i32, i32) {
    %c0_i32 = arith.constant 0 : i32
    %c0_i32_0 = arith.constant 0 : i32
    %c0_i32_1 = arith.constant 0 : i32
    %c0_i32_2 = arith.constant 0 : i32
    return %arg0, %c0_i32, %c0_i32_0, %c0_i32_1 : i32, i32, i32, i32
  }
  func.func @transform_2(%arg0: i32) -> (i32, i32) {
    %c0_i32 = arith.constant 0 : i32
    %c0_i32_0 = arith.constant 0 : i32
    %c0_i32_1 = arith.constant 0 : i32
    return %c0_i32, %c0_i32_0 : i32, i32
  }
  func.func @transform_3(%arg0: i32) -> (i32, i32) {
    %c0_i32 = arith.constant 0 : i32
    %c0_i32_0 = arith.constant 0 : i32
    %c0_i32_1 = arith.constant 0 : i32
    return %c0_i32, %c0_i32_0 : i32, i32
  }
  func.func @transform_4(%arg0: i32) -> i32 {
    %c0_i32 = arith.constant 0 : i32
    %c0_i32_0 = arith.constant 0 : i32
    return %c0_i32 : i32
  }
  func.func @transform_5(%arg0: i32) -> (i32, i32, i32, i32) {
    %c0_i32 = arith.constant 0 : i32
    %c0_i32_0 = arith.constant 0 : i32
    %c0_i32_1 = arith.constant 0 : i32
    %c0_i32_2 = arith.constant 0 : i32
    return %arg0, %c0_i32, %c0_i32_0, %c0_i32_1 : i32, i32, i32, i32
  }
}

</mosaic_0001>

<bundles_post_ra>
// kernel: tile.23
= control target key start
LH: loop header
LB: loop body
LE: loop exit
PB: predicated region body
PF: predicated region fallthrough
CT: control target
= control target key end

     0   :  { %s28_s0 = inlined_call_operand.vmem [shape: f32[8], index: 0, kind: input, shape index: {}]   ;;  %s29_s1 = inlined_call_operand.vmem [shape: f32[16,8], index: 1, kind: output, shape index: {}]  }
   0x1   :  { %v4_v0 = vld [vmem:[%s28_s0] ss:$0 sm:$0xff] }
   0x2   :  { %5 = vst [vmem:[%s29_s1] sm:$0xff] %v4_v0  ;;  %8 = vst [vmem:[%s29_s1 + $0x8] sm:$0xff] %v4_v0 }

// kernel: tile.24
= control target key start
LH: loop header
LB: loop body
LE: loop exit
PB: predicated region body
PF: predicated region fallthrough
CT: control target
= control target key end

     0   :  { %s131_s10 = smov 120   ;;  %s132_s11 = smov 104   ;;  %vm3_vm0 = vcmask 64512   ;;  %vm9_vm1 = vcmask 1048512   ;;  %vm15_vm2 = vcmask 982912   ;;  %vm21_vm3 = vcmask 917312   ;;  %s207_s0 = inlined_call_operand.vmem [shape: f32[16,8], index: 0, kind: input, shape index: {}]   ;;  %s208_s1 = inlined_call_operand.vmem [shape: f32[1,128], index: 1, kind: output, shape index: {}]  }
   0x1   :  { %v101_v0 = vld [vmem:[%s207_s0 + $0xf] sm:$0x1]   ;;  %v103_v1 = vld [vmem:[%s207_s0 + $0xd] sm:$0x1]   ;;  %v102_v2 = vld [vmem:[%s207_s0 + $0xe] sm:$0x1]  }
   0x2   :  { %7 = vrot.lane.b32.xlu0 %v101_v0, %s131_s10  ;;  %19 = vrot.lane.b32.xlu1 %v103_v1, %s132_s11  ;;  %v104_v3 = vld [vmem:[%s207_s0 + $0xc] sm:$0x1]   ;;  %s133_s16 = smov 112   ;;  %s134_s17 = smov 96   ;;  %v105_v4 = vld [vmem:[%s207_s0 + $0xb] sm:$0x1]  }
   0x3   :  { %v106_v5 = vld [vmem:[%s207_s0 + $0xa] sm:$0x1]   ;;  %v2_v6 = vld [vmem:[%s207_s0] sm:$0x1]   ;;  %s135_s24 = smov 88   ;;  %s136_s25 = smov 80  }
   0x4   :  { %4 = vst.msk [vmem:[#allocation0] sm:$0x1] %vm3_vm0, %v2_v6   ;;  %v107_v7 = vld [vmem:[%s207_s0 + $0x9] sm:$0x1]   ;;  %v108_v8 = vld [vmem:[%s207_s0 + $0x8] sm:$0x1]  }
   0x5   :  { %s137_s30 = smov 72   ;;  %s138_s2 = smov 64   ;;  %v109_v9 = vld [vmem:[%s207_s0 + $0x7] sm:$0x1]   ;;  %v110_v10 = vld [vmem:[%s207_s0 + $0x6] sm:$0x1]  }
   0x6   :  { %13 = vrot.lane.b32.xlu0 %v102_v2, %s133_s16  ;;  %25 = vrot.lane.b32.xlu1 %v104_v3, %s134_s17  ;;  %s139_s7 = smov 56   ;;  %s140_s8 = smov 48   ;;  %v111_v11 = vld [vmem:[%s207_s0 + $0x5] sm:$0x1]   ;;  %v112_v12 = vld [vmem:[%s207_s0 + $0x4] sm:$0x1]  }
   0x7   :  { %s141_s13 = smov 40   ;;  %s142_s14 = smov 32   ;;  %v113_v13 = vld [vmem:[%s207_s0 + $0x3] sm:$0x1]   ;;  %v114_v14 = vld [vmem:[%s207_s0 + $0x2] sm:$0x1]  }
   0x8   :  { %s143_s19 = smov 24   ;;  %s144_s20 = smov 16   ;;  %v115_v15 = vld [vmem:[%s207_s0 + $0x1] sm:$0x1]   ;;  %vm27_vm4 = vcmask 851712   ;;  %vm33_vm5 = vcmask 786112  }
   0x9   :  { %s145_s0 = smov 8   ;;  %vm39_vm6 = vcmask 720512   ;;  %vm45_vm7 = vcmask 654912   ;;  %vm51_vm8 = vcmask 589312   ;;  %vm57_vm9 = vcmask 523712  }
   0xa   :  { %31 = vrot.lane.b32.xlu0 %v105_v4, %s135_s24  ;;  %37 = vrot.lane.b32.xlu1 %v106_v5, %s136_s25  ;;  %vm63_vm10 = vcmask 458112   ;;  %vm69_vm11 = vcmask 392512   ;;  %vm75_vm12 = vcmask 326912   ;;  %vm81_vm13 = vcmask 261312  }
   0xb   :  { %vm87_vm14 = vcmask 195712   ;;  %vm93_vm15 = vcmask 130112  }
   0xe   :  { %43 = vrot.lane.b32.xlu0 %v107_v7, %s137_s30  ;;  %49 = vrot.lane.b32.xlu1 %v108_v8, %s138_s2 }
  0x12   :  { %55 = vrot.lane.b32.xlu0 %v109_v9, %s139_s7  ;;  %61 = vrot.lane.b32.xlu1 %v110_v10, %s140_s8 }
  0x16   :  { %67 = vrot.lane.b32.xlu0 %v111_v11, %s141_s13  ;;  %73 = vrot.lane.b32.xlu1 %v112_v12, %s142_s14 }
  0x1a   :  { %79 = vrot.lane.b32.xlu0 %v113_v13, %s143_s19  ;;  %85 = vrot.lane.b32.xlu1 %v114_v14, %s144_s20 }
  0x1e   :  { %91 = vrot.lane.b32.xlu0 %v115_v15, %s145_s0 }
  0x74   :  { %v8_v16 = vpop.permute.xlu0 %7   ;;  %v20_v17 = vpop.permute.xlu1 %19  }
  0x75   :  { %10 = vst.msk [vmem:[#allocation0] sm:$0x1] %vm9_vm1, %v8_v16  }
  0x78   :  { %v14_v18 = vpop.permute.xlu0 %13   ;;  %v26_v19 = vpop.permute.xlu1 %25  }
  0x79   :  { %16 = vst.msk [vmem:[#allocation0] sm:$0x1] %vm15_vm2, %v14_v18  }
  0x7a   :  { %22 = vst.msk [vmem:[#allocation0] sm:$0x1] %vm21_vm3, %v20_v17  }
  0x7b   :  { %28 = vst.msk [vmem:[#allocation0] sm:$0x1] %vm27_vm4, %v26_v19  }
  0x7c   :  { %v32_v20 = vpop.permute.xlu0 %31   ;;  %v38_v21 = vpop.permute.xlu1 %37  }
  0x7d   :  { %34 = vst.msk [vmem:[#allocation0] sm:$0x1] %vm33_vm5, %v32_v20  }
  0x7e   :  { %40 = vst.msk [vmem:[#allocation0] sm:$0x1] %vm39_vm6, %v38_v21  }
  0x80   :  { %v44_v22 = vpop.permute.xlu0 %43   ;;  %v50_v23 = vpop.permute.xlu1 %49  }
  0x81   :  { %46 = vst.msk [vmem:[#allocation0] sm:$0x1] %vm45_vm7, %v44_v22  }
  0x82   :  { %52 = vst.msk [vmem:[#allocation0] sm:$0x1] %vm51_vm8, %v50_v23  }
  0x84   :  { %v56_v24 = vpop.permute.xlu0 %55   ;;  %v62_v25 = vpop.permute.xlu1 %61  }
  0x85   :  { %58 = vst.msk [vmem:[#allocation0] sm:$0x1] %vm57_vm9, %v56_v24  }
  0x86   :  { %64 = vst.msk [vmem:[#allocation0] sm:$0x1] %vm63_vm10, %v62_v25  }
  0x88   :  { %v68_v26 = vpop.permute.xlu0 %67   ;;  %v74_v27 = vpop.permute.xlu1 %73  }
  0x89   :  { %70 = vst.msk [vmem:[#allocation0] sm:$0x1] %vm69_vm11, %v68_v26  }
  0x8a   :  { %76 = vst.msk [vmem:[#allocation0] sm:$0x1] %vm75_vm12, %v74_v27  }
  0x8c   :  { %v80_v28 = vpop.permute.xlu0 %79   ;;  %v86_v29 = vpop.permute.xlu1 %85  }
  0x8d   :  { %82 = vst.msk [vmem:[#allocation0] sm:$0x1] %vm81_vm13, %v80_v28  }
  0x8e   :  { %88 = vst.msk [vmem:[#allocation0] sm:$0x1] %vm87_vm14, %v86_v29  }
  0x90   :  { %v92_v30 = vpop.permute.xlu0 %91  }
  0x91   :  { %94 = vst.msk [vmem:[#allocation0] sm:$0x1] %vm93_vm15, %v92_v30  }
  0x98   :  { %v98_v31 = vld [vmem:[#allocation0] sm:$0x1] }
  0x99   :  { %100 = vst [vmem:[%s208_s1] sm:$0x1] %v98_v31 }

// kernel: resnet_block_3d.5
= control target key start
LH: loop header
LB: loop body
LE: loop exit
PB: predicated region body
PF: predicated region fallthrough
CT: control target
= control target key end

     0   :  { %s495_s20 = smov 0   ;;  %s559_s0 = inlined_call_operand.vmem [shape: bf16[2,8,8,128], index: 0, kind: input, shape index: {}]   ;;  %s560_s1 = inlined_call_operand.vmem [shape: f32[2,8,8,128], index: 1, kind: input, shape index: {}]   ;;  %s561_s2 = inlined_call_operand.vmem [shape: f32[1,128], index: 2, kind: input, shape index: {}]   ;;  %s562_s3 = inlined_call_operand.vmem [shape: f32[1,128], index: 3, kind: input, shape index: {}]   ;;  %s563_s4 = inlined_call_operand.<no memory space> [shape: f32[1], index: 4, kind: input, shape index: {}]   ;;  %s564_s5 = inlined_call_operand.vmem [shape: f32[2,8,8,128], index: 5, kind: output, shape index: {}]  }
   0x1   :  { %10 = sst [smem:[#allocation2]] %s563_s4 }
   0x2 LB: > { %s409_s21 = sadd.s32 4294967295, %s460_s20   ;;  %p413_p0 = scmp.ge.s32.totalorder %s460_s20, 1  ;;  %s460_s20 = sphi %s495_s20, %s16_s20  }
   0x3   : > { %p198_p1 = scmp.lt.s32.totalorder %s460_s20, 3 }
   0x5   : > { %p199_p2 = pnand %p413_p0, %p198_p1 }
   0x6   : > { %p231_p3 = scmp.lt.s32.totalorder (!%p199_p2), %s409_s21, 1  ;;  %s246_s22 = sld [smem:[#allocation2]] (!%p199_p2)  ;;  %v420_v0 = vld [vmem:[%s561_s2] ss:$0 sm:$0xff] (!%p199_p2) }
   0x7   : > { %202 = sbr.rel (%p199_p2) target bundleno = 34 (0x22), region = 40  ;;  %v421_v5 = vld [vmem:[%s562_s3] ss:$0 sm:$0xff] (!%p199_p2) }
   0xc   : > { %v523_v6 = vstv (!%p199_p2), %s246_s22 }
   0xe   : > { %s566_s21 = smov (!%p231_p3, %s409_s21), 1 }
   0xf   : > { %s424_s4 = sshll.u32 %s566_s21, 5  ;;  %s425_s23 = sshll.u32 %s566_s21, 6 }
  0x10   : > { %s235_s26 = scalar_lea.vmem %s559_s0, %s424_s4  ;;  %s518_s6 = scalar_lea.vmem %s560_s1, %s425_s23 }
  0x11   : > { %v428_v1 = vld [vmem:[%s235_s26] sm:$0xff]   ;;  %v443_v4 = vld [vmem:[%s235_s26 + $0x8] sm:$0xff]   ;;  %v444_v9 = vld [vmem:[%s235_s26 + $0x10] sm:$0xff]   ;;  %s536_s11 = scalar_lea.vmem %s564_s5, %s425_s23 }
  0x12   : > { %v429_v2 = vunpack.c.l.bf16 %v428_v1  ;;  %v430_v3 = vunpack.c.h.bf16 %v428_v1  ;;  %v433_v7 = vunpack.c.l.bf16 %v443_v4  ;;  %v434_v8 = vunpack.c.h.bf16 %v443_v4  ;;  %v445_v14 = vld [vmem:[%s235_s26 + $0x18] sm:$0xff]   ;;  %v293_v15 = vld [vmem:[%s518_s6] sm:$0xff]  ;;  %v294_v16 = vld [vmem:[%s518_s6 + $0x8] sm:$0xff] }
  0x13   : > { %v437_v12 = vunpack.c.l.bf16 %v444_v9  ;;  %v438_v13 = vunpack.c.h.bf16 %v444_v9  ;;  %v441_v19 = vunpack.c.l.bf16 %v445_v14  ;;  %v442_v20 = vunpack.c.h.bf16 %v445_v14  ;;  %v295_v23 = vld [vmem:[%s518_s6 + $0x10] sm:$0xff]  ;;  %v296_v24 = vld [vmem:[%s518_s6 + $0x18] sm:$0xff]  ;;  %v297_v37 = vld [vmem:[%s518_s6 + $0x20] sm:$0xff] }
  0x14   : > { %v271_v10 = vmul.f32 %v429_v2, %v420_v0  ;;  %v272_v11 = vmul.f32 %v430_v3, %v420_v0  ;;  %v273_v17 = vmul.f32 %v433_v7, %v420_v0  ;;  %v274_v18 = vmul.f32 %v434_v8, %v420_v0  ;;  %v298_v38 = vld [vmem:[%s518_s6 + $0x28] sm:$0xff]  ;;  %v299_v43 = vld [vmem:[%s518_s6 + $0x30] sm:$0xff]  ;;  %v300_v44 = vld [vmem:[%s518_s6 + $0x38] sm:$0xff] }
  0x15   : > { %v275_v25 = vmul.f32 %v437_v12, %v420_v0  ;;  %v276_v26 = vmul.f32 %v438_v13, %v420_v0  ;;  %v277_v29 = vmul.f32 %v441_v19, %v420_v0  ;;  %v278_v30 = vmul.f32 %v442_v20, %v420_v0 }
  0x16   : > { %v285_v21 = vadd.f32 %v421_v5, %v271_v10  ;;  %v286_v22 = vadd.f32 %v421_v5, %v272_v11  ;;  %v287_v27 = vadd.f32 %v421_v5, %v273_v17  ;;  %v288_v28 = vadd.f32 %v421_v5, %v274_v18 }
  0x17   : > { %v289_v33 = vadd.f32 %v421_v5, %v275_v25  ;;  %v290_v34 = vadd.f32 %v421_v5, %v276_v26  ;;  %v291_v39 = vadd.f32 %v421_v5, %v277_v29  ;;  %v292_v40 = vadd.f32 %v421_v5, %v278_v30 }
  0x18   : > { %v301_v31 = vadd.f32 %v293_v15, %v285_v21  ;;  %v302_v32 = vadd.f32 %v294_v16, %v286_v22  ;;  %v303_v35 = vadd.f32 %v295_v23, %v287_v27  ;;  %v304_v36 = vadd.f32 %v296_v24, %v288_v28 }
  0x19   : > { %v305_v49 = vadd.f32 %v297_v37, %v289_v33  ;;  %v306_v50 = vadd.f32 %v298_v38, %v290_v34  ;;  %v307_v53 = vadd.f32 %v299_v43, %v291_v39  ;;  %v308_v54 = vadd.f32 %v300_v44, %v292_v40 }
  0x1a   : > { %vm309_vm0 = vcmp.ge.f32.partialorder %v301_v31, 0.0  ;;  %v318_v41 = vmul.f32 %v523_v6, %v301_v31  ;;  %vm310_vm1 = vcmp.ge.f32.partialorder %v302_v32, 0.0  ;;  %v319_v42 = vmul.f32 %v523_v6, %v302_v32 }
  0x1b   : > { %vm311_vm2 = vcmp.ge.f32.partialorder %v303_v35, 0.0  ;;  %v320_v45 = vmul.f32 %v523_v6, %v303_v35  ;;  %vm312_vm3 = vcmp.ge.f32.partialorder %v304_v36, 0.0  ;;  %v321_v46 = vmul.f32 %v523_v6, %v304_v36 }
  0x1c   : > { %v326_v47 = vsel %vm309_vm0, %v301_v31, %v318_v41  ;;  %v327_v48 = vsel %vm310_vm1, %v302_v32, %v319_v42  ;;  %vm313_vm4 = vcmp.ge.f32.partialorder %v305_v49, 0.0  ;;  %v322_v55 = vmul.f32 %v523_v6, %v305_v49 }
  0x1d   : > { %334 = vst [vmem:[%s536_s11] sm:$0xff] %v326_v47  ;;  %335 = vst [vmem:[%s536_s11 + $0x8] sm:$0xff] %v327_v48  ;;  %v328_v51 = vsel %vm311_vm2, %v303_v35, %v320_v45  ;;  %v329_v52 = vsel %vm312_vm3, %v304_v36, %v321_v46  ;;  %vm314_vm5 = vcmp.ge.f32.partialorder %v306_v50, 0.0  ;;  %v323_v56 = vmul.f32 %v523_v6, %v306_v50 }
  0x1e   : > { %336 = vst [vmem:[%s536_s11 + $0x10] sm:$0xff] %v328_v51  ;;  %337 = vst [vmem:[%s536_s11 + $0x18] sm:$0xff] %v329_v52  ;;  %vm315_vm6 = vcmp.ge.f32.partialorder %v307_v53, 0.0  ;;  %v324_v57 = vmul.f32 %v523_v6, %v307_v53  ;;  %vm316_vm7 = vcmp.ge.f32.partialorder %v308_v54, 0.0  ;;  %v325_v58 = vmul.f32 %v523_v6, %v308_v54 }
  0x1f   : > { %v330_v59 = vsel %vm313_vm4, %v305_v49, %v322_v55  ;;  %v331_v60 = vsel %vm314_vm5, %v306_v50, %v323_v56 }
  0x20   : > { %338 = vst [vmem:[%s536_s11 + $0x20] sm:$0xff] %v330_v59  ;;  %339 = vst [vmem:[%s536_s11 + $0x28] sm:$0xff] %v331_v60  ;;  %v332_v61 = vsel %vm315_vm6, %v307_v53, %v324_v57  ;;  %v333_v62 = vsel %vm316_vm7, %v308_v54, %v325_v58 }
  0x21   : > { %340 = vst [vmem:[%s536_s11 + $0x30] sm:$0xff] %v332_v61  ;;  %341 = vst [vmem:[%s536_s11 + $0x38] sm:$0xff] %v333_v62 }
  0x22 PF: > { %s16_s20 = sadd.s32 1, %s460_s20  }
  0x23   : > { %p13_p4 = scmp.ge.s32.totalorder %s16_s20, 4  }
  0x25   :  { %15 = sbr.rel (!%p13_p4) target bundleno = 2 (0x2), region = 73 }

// kernel: resnet_block_3d.3
= control target key start
LH: loop header
LB: loop body
LE: loop exit
PB: predicated region body
PF: predicated region fallthrough
CT: control target
= control target key end

     0   :  { %s2291_s21 = smov 0   ;;  %s2742_s0 = inlined_call_operand.vmem [shape: f32[2,8,8,128], index: 0, kind: input, shape index: {}]   ;;  %s2743_s1 = inlined_call_operand.vmem [shape: bf16[3,384,128], index: 1, kind: input, shape index: {}]   ;;  %s2744_s2 = inlined_call_operand.vmem [shape: f32[1,128], index: 2, kind: input, shape index: {}, may-alias: {2,3}]   ;;  %s2745_s3 = inlined_call_operand.vmem [shape: f32[1,128], index: 3, kind: input, shape index: {}, may-alias: {2,3}]   ;;  %s2746_s4 = inlined_call_operand.<no memory space> [shape: f32[1], index: 4, kind: input, shape index: {}]   ;;  %s2747_s5 = inlined_call_operand.vmem [shape: bf16[2,8,8,128], index: 5, kind: output, shape index: {0}]   ;;  %s2748_s6 = inlined_call_operand.vmem [shape: f32[2,1,256], index: 6, kind: output, shape index: {1}]  }
   0x1 LB: > { %s1664_s2 = sadd.s32 4294967295, %s2252_s21   ;;  %p1668_p0 = scmp.ge.s32.totalorder %s2252_s21, 1  ;;  %s2252_s21 = sphi %s2291_s21, %s18_s21  }
   0x2   : > { %p216_p1 = scmp.lt.s32.totalorder %s2252_s21, 3 }
   0x4   : > { %p217_p2 = pnand %p1668_p0, %p216_p1 }
   0x5   : > { %v2174_v0 = vld [vmem:[%s2743_s1 + $0x100] sm:$0xff] (!%p217_p2)   ;;  %v2177_v3 = vld [vmem:[%s2743_s1 + $0x108] sm:$0xff] (!%p217_p2)   ;;  %v2180_v6 = vld [vmem:[%s2743_s1 + $0x110] sm:$0xff] (!%p217_p2)   ;;  %p250_p3 = scmp.lt.s32.totalorder (!%p217_p2), %s1664_s2, 1  ;;  %vm345_vm0 = vcmask (!%p217_p2), 1040384   ;;  %vm356_vm1 = vcmask (!%p217_p2), 1044480  }
   0x6   : > { %220 = sbr.rel (%p217_p2) target bundleno = 372 (0x174), region = 40  ;;  %v2175_v1 = vld [vmem:[%s2743_s1 + $0x140] sm:$0xff] (!%p217_p2)   ;;  %1896 = vmatprep.subr.bf16.mxu0 (!%p217_p2), %v2174_v0  ;;  %v2178_v4 = vld [vmem:[%s2743_s1 + $0x148] sm:$0xff] (!%p217_p2)   ;;  %v2181_v7 = vld [vmem:[%s2743_s1 + $0x150] sm:$0xff] (!%p217_p2)   ;;  %vm346_vm2 = vsmask.f32 (!%p217_p2), 256 }
   0x7   : > { %v2176_v2 = vld [vmem:[%s2743_s1 + $0xc0] sm:$0xff] (!%p217_p2)   ;;  %2052 = vmatprep.subr.bf16.mxu1 (!%p217_p2), %v2175_v1  ;;  %v2179_v5 = vld [vmem:[%s2743_s1 + $0xc8] sm:$0xff] (!%p217_p2)   ;;  %v2182_v8 = vld [vmem:[%s2743_s1 + $0xd0] sm:$0xff] (!%p217_p2)   ;;  %vm357_vm3 = vsmask.f32 (!%p217_p2), 4352 }
   0x8   : > { %1897 = vmatpush3.bf16.msra.mxu0 (!%p217_p2), %v2176_v2  ;;  %2053 = vmatpush3.bf16.msra.mxu1 (!%p217_p2), %v2175_v1  ;;  %v2183_v9 = vld [vmem:[%s2743_s1 + $0x118] sm:$0xff] (!%p217_p2)   ;;  %v2186_v12 = vld [vmem:[%s2743_s1 + $0x120] sm:$0xff] (!%p217_p2)   ;;  %v2189_v15 = vld [vmem:[%s2743_s1 + $0x128] sm:$0xff] (!%p217_p2)  }
   0x9   : > { %1898 = vmatprep.subr.bf16.mxu0 (!%p217_p2), %v2177_v3  ;;  %2054 = vmatprep.subr.bf16.mxu1 (!%p217_p2), %v2178_v4  ;;  %v2184_v10 = vld [vmem:[%s2743_s1 + $0x158] sm:$0xff] (!%p217_p2)   ;;  %v2187_v13 = vld [vmem:[%s2743_s1 + $0x160] sm:$0xff] (!%p217_p2)   ;;  %v2190_v16 = vld [vmem:[%s2743_s1 + $0x168] sm:$0xff] (!%p217_p2)  }
   0xa   : > { %v2185_v11 = vld [vmem:[%s2743_s1 + $0xd8] sm:$0xff] (!%p217_p2)   ;;  %v2188_v14 = vld [vmem:[%s2743_s1 + $0xe0] sm:$0xff] (!%p217_p2)   ;;  %v2191_v17 = vld [vmem:[%s2743_s1 + $0xe8] sm:$0xff] (!%p217_p2)  }
   0xb   : > { %v2192_v18 = vld [vmem:[%s2743_s1 + $0x130] sm:$0xff] (!%p217_p2)   ;;  %v2195_v21 = vld [vmem:[%s2743_s1 + $0x138] sm:$0xff] (!%p217_p2)   ;;  %v2198_v34 = vld [vmem:[%s2743_s1 + $0x40] sm:$0xff] (!%p217_p2)  }
   0xc   : > { %1899 = vmatpush3.bf16.msra.mxu0 (!%p217_p2), %v2179_v5  ;;  %2055 = vmatpush3.bf16.msra.mxu1 (!%p217_p2), %v2178_v4  ;;  %v2193_v19 = vld [vmem:[%s2743_s1 + $0x170] sm:$0xff] (!%p217_p2)   ;;  %v2196_v24 = vld [vmem:[%s2743_s1 + $0x178] sm:$0xff] (!%p217_p2)   ;;  %v2392_v37 = vld [vmem:[%s2743_s1 + $0x80] sm:$0xff] (!%p217_p2)  }
   0xd   : > { %1900 = vmatprep.subr.bf16.mxu0 %v2180_v6  ;;  %2056 = vmatprep.subr.bf16.mxu1 %v2181_v7  ;;  %s2754_s2 = smov (!%p250_p3, %s1664_s2), 1  ;;  %v2194_v20 = vld [vmem:[%s2743_s1 + $0xf0] sm:$0xff]   ;;  %v2197_v28 = vld [vmem:[%s2743_s1 + $0xf8] sm:$0xff]   ;;  %vm2397_vm4 = vmand %vm345_vm0, %vm346_vm2 }
   0xe   : > { %s1871_s29 = sshll.u32 %s2754_s2, 6  ;;  %vm2403_vm5 = vmand %vm356_vm1, %vm357_vm3  ;;  %v2217_v46 = vld [vmem:[%s2743_s1 + $0xb0] sm:$0xff]   ;;  %s1872_s20 = sshll.u32 %s2754_s2, 5 }
   0xf   : > { %s2369_s14 = scalar_lea.vmem %s2742_s0, %s1871_s29  ;;  %s2727_s4 = scalar_lea.vmem %s2747_s5, %s1872_s20 }
  0x10   : > { %1901 = vmatpush3.bf16.msra.mxu0 %v2182_v8  ;;  %2057 = vmatpush3.bf16.msra.mxu1 %v2181_v7  ;;  %v265_v22 = vld [vmem:[%s2369_s14] sm:$0xff]  ;;  %v266_v23 = vld [vmem:[%s2369_s14 + $0x8] sm:$0xff]  ;;  %v267_v27 = vld [vmem:[%s2369_s14 + $0x10] sm:$0xff]  ;;  %s1673_s22 = sshll.u32 %s2754_s2, 1 }
  0x11   : > { %1902 = vmatprep.subr.bf16.mxu0 %v2183_v9  ;;  %2058 = vmatprep.subr.bf16.mxu1 %v2184_v10  ;;  %v273_v25 = vpack.c.bf16 %v265_v22, %v265_v22  ;;  %v274_v26 = vpack.c.bf16 %v266_v23, %v266_v23  ;;  %v275_v29 = vpack.c.bf16 %v267_v27, %v267_v27  ;;  %v268_v38 = vld [vmem:[%s2369_s14 + $0x18] sm:$0xff]  ;;  %v2202_v22 = vld [vmem:[%s2743_s1 + $0x88] sm:$0xff]   ;;  %s263_s25 = scalar_lea.vmem %s2748_s6, %s1673_s22 }
  0x12   : > { %v276_v41 = vpack.c.bf16 %v268_v38, %v268_v38 }
  0x13   : > { %v282_v30 = vshrl.u32 %v273_v25, 16  ;;  %v285_v31 = vshll.u32 %v273_v25, 16  ;;  %v289_v32 = vshrl.u32 %v274_v26, 16  ;;  %v292_v33 = vshll.u32 %v274_v26, 16  ;;  %v2203_v26 = vld [vmem:[%s2743_s1 + $0x8] sm:$0xff]  }
  0x14   : > { %1903 = vmatpush3.bf16.msra.mxu0 %v2185_v11  ;;  %2059 = vmatpush3.bf16.msra.mxu1 %v2184_v10  ;;  %v296_v35 = vshrl.u32 %v275_v29, 16  ;;  %v299_v36 = vshll.u32 %v275_v29, 16  ;;  %v303_v47 = vshrl.u32 %v276_v41, 16  ;;  %v306_v52 = vshll.u32 %v276_v41, 16  ;;  %v2200_v11 = vld [vmem:[%s2743_s1] sm:$0xff]   ;;  %v271_v41 = vld [vmem:[%s2369_s14 + $0x30] sm:$0xff] }
  0x15   : > { %1904 = vmatprep.subr.bf16.mxu0 %v2186_v12  ;;  %2060 = vmatprep.subr.bf16.mxu1 %v2187_v13  ;;  %v284_v39 = vrot.slane %v282_v30, 7  ;;  %v291_v40 = vrot.slane %v289_v32, 7  ;;  %v2201_v12 = vld [vmem:[%s2743_s1 + $0x48] sm:$0xff]   ;;  %v2204_v32 = vld [vmem:[%s2743_s1 + $0x50] sm:$0xff]  }
  0x16   : > { %v298_v43 = vrot.slane %v296_v35, 7  ;;  %v305_v51 = vrot.slane %v303_v47, 7  ;;  %v2205_v35 = vld [vmem:[%s2743_s1 + $0x90] sm:$0xff]   ;;  %v2207_v47 = vld [vmem:[%s2743_s1 + $0x58] sm:$0xff]  }
  0x17   : > { %v287_v44 = vor.u32 %v285_v31, %v284_v39  ;;  %v294_v45 = vor.u32 %v292_v33, %v291_v40 }
  0x18   : > { %1905 = vmatpush3.bf16.msra.mxu0 %v2188_v14  ;;  %2061 = vmatpush3.bf16.msra.mxu1 %v2187_v13  ;;  %v301_v48 = vor.u32 %v299_v36, %v298_v43  ;;  %v308_v1 = vor.u32 %v306_v52, %v305_v51  ;;  %v272_v43 = vld [vmem:[%s2369_s14 + $0x38] sm:$0xff] }
  0x19   : > { %1906 = vmatprep.subr.bf16.mxu0 %v2189_v15  ;;  %2062 = vmatprep.subr.bf16.mxu1 %v2190_v16  ;;  %v348_v49 = vsel %vm2397_vm4, 0, %v287_v44  ;;  %v349_v50 = vsel %vm2397_vm4, 0, %v294_v45  ;;  %v2254_v44 = vmov 0   ;;  %v2208_v51 = vld [vmem:[%s2743_s1 + $0x98] sm:$0xff]  }
  0x1a   : > { %v2414_v53 = vsel %vm2403_vm5, %v348_v49, 0  ;;  %v2418_v54 = vsel %vm2403_vm5, %v349_v50, 0  ;;  %v350_v55 = vsel %vm2397_vm4, 0, %v301_v48  ;;  %v351_v7 = vsel %vm2397_vm4, 0, %v308_v1  ;;  %v2209_v52 = vld [vmem:[%s2743_s1 + $0x18] sm:$0xff]  }
  0x1b   : > { %v375_v56 = vshrl.u32 %v2414_v53, 16  ;;  %v377_v57 = vshll.u32 %v2414_v53, 16  ;;  %v382_v58 = vshrl.u32 %v2418_v54, 16  ;;  %v384_v59 = vshll.u32 %v2418_v54, 16 }
  0x1c   : > { %1907 = vmatpush3.bf16.msra.mxu0 %v2191_v17  ;;  %2063 = vmatpush3.bf16.msra.mxu1 %v2190_v16  ;;  %v2428_v60 = vsel %vm2403_vm5, %v350_v55, 0  ;;  %v440_v61 = vrot.slane %v2414_v53, 1  ;;  %v441_v62 = vrot.slane %v2418_v54, 1  ;;  %v1722_v9 = vcombine.low %v2414_v53, %v2418_v54 }
  0x1d   : > { %1908 = vmatprep.subr.bf16.mxu0 %v2192_v18  ;;  %2064 = vmatprep.subr.bf16.mxu1 %v2193_v19  ;;  %v379_v63 = vrot.slane %v377_v57, 1  ;;  %v386_v0 = vrot.slane %v384_v59, 1  ;;  %v442_v2 = vrot.slane %v2428_v60, 1  ;;  %v391_v4 = vshll.u32 %v2428_v60, 16  ;;  %v269_v18 = vld [vmem:[%s2369_s14 + $0x20] sm:$0xff] }
  0x1e   : > { %v1724_v3 = vcombine.low %v440_v61, %v441_v62  ;;  %v389_v8 = vshrl.u32 %v2428_v60, 16  ;;  %v2449_v10 = vsel %vm2403_vm5, %v351_v7, 0  ;;  %v2495_v45 = vrot.slane %v2254_v44, 1 }
  0x1f   : > { %v2438_v5 = vor.u32 %v379_v63, %v375_v56  ;;  %v2440_v6 = vor.u32 %v386_v0, %v382_v58  ;;  %v393_v13 = vrot.slane %v391_v4, 1  ;;  %v443_v15 = vrot.slane %v2449_v10, 1 }
  0x20   : > { %1909 = vmatpush3.bf16.msra.mxu0 %v2194_v20  ;;  %2065 = vmatpush3.bf16.msra.mxu1 %v2193_v19  ;;  %v396_v16 = vshrl.u32 %v2449_v10, 16  ;;  %v398_v17 = vshll.u32 %v2449_v10, 16  ;;  %v270_v19 = vld [vmem:[%s2369_s14 + $0x28] sm:$0xff]  ;;  %v277_v20 = vpack.c.bf16 %v269_v18, %v269_v18  ;;  %v1725_v38 = vcombine.low %v2428_v60, %v2449_v10  ;;  %v2212_v18 = vld [vmem:[%s2743_s1 + $0x20] sm:$0xff]  }
  0x21   : > { %1910 = vmatprep.subr.bf16.mxu0 %v2195_v21  ;;  %2066 = vmatprep.subr.bf16.mxu1 %v2196_v24  ;;  %v1723_v14 = vcombine.low %v2438_v5, %v2440_v6  ;;  %v1727_v21 = vcombine.low %v442_v2, %v443_v15  ;;  %v2471_v23 = vor.u32 %v393_v13, %v389_v8  ;;  %v2211_v13 = vld [vmem:[%s2743_s1 + $0xa0] sm:$0xff]  }
  0x22   : > { %2068 = vmatprep.mubr.bf16.mxu1 %v1724_v3  ;;  %v278_v25 = vpack.c.bf16 %v270_v19, %v270_v19  ;;  %v310_v27 = vshrl.u32 %v277_v20, 16  ;;  %v279_v49 = vpack.c.bf16 %v271_v41, %v271_v41  ;;  %v280_v50 = vpack.c.bf16 %v272_v43, %v272_v43  ;;  %v2210_v3 = vld [vmem:[%s2743_s1 + $0x60] sm:$0xff]  }
  0x23   : > { %772 = vmatprep.mubr.bf16.mxu0 %v1723_v14 }
  0x24   : > { %1911 = vmatpush3.bf16.msra.mxu0 %v2197_v28  ;;  %2067 = vmatpush3.bf16.msra.mxu1 %v2196_v24  ;;  %v400_v24 = vrot.slane %v398_v17, 1  ;;  %v313_v28 = vshll.u32 %v277_v20, 16  ;;  %v317_v30 = vshrl.u32 %v278_v25, 16  ;;  %v320_v31 = vshll.u32 %v278_v25, 16  ;;  %v2213_v25 = vld [vmem:[%s2743_s1 + $0x68] sm:$0xff]  }
  0x25   : > { %1948 = vmatprep.subr.bf16.mxu0 %v2198_v34  ;;  %2076 = vmatprep.subr.bf16.mxu1 %v2392_v37  ;;  %v312_v33 = vrot.slane %v310_v27, 7  ;;  %v324_v63 = vshrl.u32 %v279_v49, 16  ;;  %v327_v4 = vshll.u32 %v279_v49, 16  ;;  %v1760_v49 = vcombine.low %v2495_v45, %v440_v61  ;;  %v2219_v61 = vld [vmem:[%s2743_s1 + $0x78] sm:$0xff]  }
  0x26   : > { %v2476_v29 = vor.u32 %v400_v24, %v396_v16  ;;  %v319_v36 = vrot.slane %v317_v30, 7  ;;  %v2214_v30 = vld [vmem:[%s2743_s1 + $0xa8] sm:$0xff]  }
  0x27   : > { %773 = vmatmul.mubr.bf16.vlgmr.msra.gmra.mrb[0].mxu0 %v1722_v9  ;;  %2069 = vmatmul.mubr.bf16.vlgmr.msra.gmra.mrb[0].mxu1 %v1727_v21  ;;  %v315_v39 = vor.u32 %v313_v28, %v312_v33  ;;  %v326_v8 = vrot.slane %v324_v63, 7  ;;  %v331_v9 = vshrl.u32 %v280_v50, 16  ;;  %v1759_v63 = vcombine.low %v2495_v45, %v2438_v5 }
  0x28   : > { %1949 = vmatpush3.bf16.msra.mxu0 %v2200_v11  ;;  %2077 = vmatpush3.bf16.msra.mxu1 %v2392_v37  ;;  %v1726_v34 = vcombine.low %v2471_v23, %v2476_v29  ;;  %v2206_v37 = vld [vmem:[%s2743_s1 + $0x10] sm:$0xff]   ;;  %v322_v40 = vor.u32 %v320_v31, %v319_v36  ;;  %v334_v11 = vshll.u32 %v280_v50, 16  ;;  %v1763_v5 = vcombine.low %v441_v62, %v442_v2  ;;  %v2224_v62 = vld [vmem:[%s2743_s1 + $0x180] sm:$0xff]  }
  0x29   : > { %1950 = vmatprep.subr.bf16.mxu0 %v2201_v12  ;;  %2078 = vmatprep.subr.bf16.mxu1 %v2202_v22  ;;  %v352_v48 = vsel %vm2397_vm4, 0, %v315_v39  ;;  %v329_v19 = vor.u32 %v327_v4, %v326_v8  ;;  %v333_v20 = vrot.slane %v331_v9, 7  ;;  %v2226_v8 = vld [vmem:[%s2743_s1 + $0x208] sm:$0xff]   ;;  %v2635_v2 = vcombine.low %v2440_v6, %v2471_v23  ;;  %v2228_v23 = vld [vmem:[%s2743_s1 + $0x1d0] sm:$0xff]  }
  0x2a   : > { %780 = vmatprep.mubr.bf16.mxu0 %v1726_v34  ;;  %v353_v55 = vsel %vm2397_vm4, 0, %v322_v40  ;;  %v2512_v56 = vsel %vm2403_vm5, %v352_v48, 0  ;;  %v2216_v40 = vld [vmem:[%s2743_s1 + $0x70] sm:$0xff]   ;;  %v2227_v6 = vld [vmem:[%s2743_s1 + $0x188] sm:$0xff]   ;;  %v1761_v9 = vcombine.low %v2418_v54, %v2428_v60  ;;  %v2235_v54 = vld [vmem:[%s2743_s1 + $0x220] sm:$0xff]  }
  0x2b   : > { %v2516_v57 = vsel %vm2403_vm5, %v353_v55, 0  ;;  %v403_v58 = vshrl.u32 %v2512_v56, 16  ;;  %v405_v59 = vshll.u32 %v2512_v56, 16  ;;  %v444_v14 = vrot.slane %v2512_v56, 1  ;;  %v2233_v60 = vld [vmem:[%s2743_s1 + $0x198] sm:$0xff]  }
  0x2c   : > { %1951 = vmatpush3.bf16.msra.mxu0 %v2203_v26  ;;  %2079 = vmatpush3.bf16.msra.mxu1 %v2202_v22  ;;  %v410_v0 = vshrl.u32 %v2516_v57, 16  ;;  %v412_v1 = vshll.u32 %v2516_v57, 16  ;;  %v445_v16 = vrot.slane %v2516_v57, 1  ;;  %v1728_v24 = vcombine.low %v2512_v56, %v2516_v57 }
  0x2d   : > { %1952 = vmatprep.subr.bf16.mxu0 %v2204_v32  ;;  %2080 = vmatprep.subr.bf16.mxu1 %v2205_v35  ;;  %v407_v7 = vrot.slane %v405_v59, 1  ;;  %v336_v26 = vor.u32 %v334_v11, %v333_v20  ;;  %v354_v27 = vsel %vm2397_vm4, 0, %v329_v19  ;;  %v2215_v32 = vld [vmem:[%s2743_s1 + $0x28] sm:$0xff]   ;;  %v2220_v59 = vld [vmem:[%s2743_s1 + $0xb8] sm:$0xff]   ;;  %v2623_v4 = vcombine.low %v443_v15, %v444_v14 }
  0x2e   : > { %v414_v12 = vrot.slane %v412_v1, 1  ;;  %v1730_v22 = vcombine.low %v444_v14, %v445_v16  ;;  %v2555_v31 = vsel %vm2403_vm5, %v354_v27, 0  ;;  %v2222_v1 = vld [vmem:[%s2743_s1 + $0x1c0] sm:$0xff]   ;;  %v2225_v15 = vld [vmem:[%s2743_s1 + $0x1c8] sm:$0xff]   ;;  %v2232_v11 = vld [vmem:[%s2743_s1 + $0x218] sm:$0xff]  }
  0x2f   : > { %781 = vmatmul.mubr.bf16.gmra.mrb[4].mxu0 %v1725_v38  ;;  %v2530_v17 = vor.u32 %v407_v7, %v403_v58  ;;  %v355_v33 = vsel %vm2397_vm4, 0, %v336_v26  ;;  %v417_v34 = vshrl.u32 %v2555_v31, 16  ;;  %v446_v38 = vrot.slane %v2555_v31, 1  ;;  %v2231_v14 = vld [vmem:[%s2743_s1 + $0x1d8] sm:$0xff]   ;;  %v2237_v20 = vld [vmem:[%s2743_s1 + $0x1e8] sm:$0xff]  }
  0x30   : > { %1953 = vmatpush3.bf16.msra.mxu0 %v2206_v37  ;;  %2081 = vmatpush3.bf16.msra.mxu1 %v2205_v35  ;;  %v2535_v21 = vor.u32 %v414_v12, %v410_v0  ;;  %v419_v35 = vshll.u32 %v2555_v31, 16  ;;  %v2566_v36 = vsel %vm2403_vm5, %v355_v33, 0  ;;  %v2221_v0 = vld [vmem:[%s2743_s1 + $0x38] sm:$0xff]   ;;  %v1758_v7 = vcombine.low %v2254_v44, %v2414_v53  ;;  %v2229_v53 = vld [vmem:[%s2743_s1 + $0x210] sm:$0xff]  }
  0x31   : > { %1954 = vmatprep.subr.bf16.mxu0 %v2207_v47  ;;  %2082 = vmatprep.subr.bf16.mxu1 %v2208_v51  ;;  %v424_v39 = vshrl.u32 %v2566_v36, 16  ;;  %v426_v42 = vshll.u32 %v2566_v36, 16  ;;  %v447_v41 = vrot.slane %v2566_v36, 1  ;;  %v2580_v43 = vcombine.low %v2566_v36, %v2254_v44  ;;  %v2230_v12 = vld [vmem:[%s2743_s1 + $0x190] sm:$0xff]   ;;  %v2243_v26 = vld [vmem:[%s2743_s1 + $0x1f8] sm:$0xff]  }
  0x32   : > { %v1729_v28 = vcombine.low %v2530_v17, %v2535_v21  ;;  %2072 = vmatprep.mubr.bf16.mxu1 %v1730_v22  ;;  %v421_v37 = vrot.slane %v419_v35, 1  ;;  %v1731_v55 = vcombine.low %v2555_v31, %v2566_v36  ;;  %v1769_v44 = vcombine.low %v445_v16, %v446_v38 }
  0x33   : > { %v428_v48 = vrot.slane %v426_v42, 1  ;;  %v1733_v50 = vcombine.low %v446_v38, %v447_v41  ;;  %v1764_v16 = vcombine.low %v2449_v10, %v2512_v56  ;;  %v2241_v10 = vld [vmem:[%s2743_s1 + $0x230] sm:$0xff]   ;;  %v2239_v56 = vld [vmem:[%s2743_s1 + $0x1a8] sm:$0xff]   ;;  %v1767_v22 = vcombine.low %v2516_v57, %v2555_v31  ;;  %v2245_v57 = vld [vmem:[%s2743_s1 + $0x1b8] sm:$0xff]  }
  0x34   : > { %1955 = vmatpush3.bf16.msra.mxu0 %v2209_v52  ;;  %2083 = vmatpush3.bf16.msra.mxu1 %v2208_v51  ;;  %v2582_v47 = vor.u32 %v421_v37, %v417_v34  ;;  %v2218_v51 = vld [vmem:[%s2743_s1 + $0x30] sm:$0xff]   ;;  %v1844_v27 = vcombine.low %v447_v41, %v2495_v45 }
  0x35   : > { %1956 = vmatprep.subr.bf16.mxu0 %v2210_v3  ;;  %2084 = vmatprep.subr.bf16.mxu1 %v2211_v13  ;;  %v2592_v52 = vor.u32 %v428_v48, %v424_v39  ;;  %v2223_v3 = vld [vmem:[%s2743_s1 + $0x200] sm:$0xff]  }
  0x36   : > { %788 = vmatprep.mubr.bf16.mxu0 %v1729_v28  ;;  %2073 = vmatmul.mubr.bf16.gmra.mrb[4].mxu1 %v1733_v50  ;;  %v1768_v19 = vcombine.low %v2535_v21, %v2582_v47  ;;  %v2240_v21 = vld [vmem:[%s2743_s1 + $0x1f0] sm:$0xff]  }
  0x37   : > { %789 = vmatmul.mubr.bf16.gmra.mrb[8].mxu0 %v1728_v24  ;;  %v1732_v58 = vcombine.low %v2582_v47, %v2592_v52  ;;  %2092 = vmatprep.mubr.bf16.mxu1 %v1760_v49  ;;  %v2244_v24 = vld [vmem:[%s2743_s1 + $0x238] sm:$0xff]   ;;  %v1843_v28 = vcombine.low %v2592_v52, %v2495_v45 }
  0x38   : > { %1957 = vmatpush3.bf16.msra.mxu0 %v2212_v18  ;;  %2085 = vmatpush3.bf16.msra.mxu1 %v2211_v13  ;;  %v1765_v13 = vcombine.low %v2476_v29, %v2530_v17  ;;  %v2234_v29 = vld [vmem:[%s2743_s1 + $0x1e0] sm:$0xff]   ;;  %v2238_v17 = vld [vmem:[%s2743_s1 + $0x228] sm:$0xff]  }
  0x39   : > { %1958 = vmatprep.subr.bf16.mxu0 %v2213_v25  ;;  %2086 = vmatprep.subr.bf16.mxu1 %v2214_v30  ;;  %v2236_v18 = vld [vmem:[%s2743_s1 + $0x1a0] sm:$0xff]   ;;  %v2242_v25 = vld [vmem:[%s2743_s1 + $0x1b0] sm:$0xff]  }
  0x3a   : > { %796 = vmatprep.mubr.bf16.mxu0 %v1732_v58 }
  0x3c   : > { %1959 = vmatpush3.bf16.msra.mxu0 %v2215_v32  ;;  %2087 = vmatpush3.bf16.msra.mxu1 %v2214_v30 }
  0x3d   : > { %1960 = vmatprep.subr.bf16.mxu0 %v2216_v40  ;;  %2088 = vmatprep.subr.bf16.mxu1 %v2217_v46 }
  0x3f   : > { %797 = vmatmul.mubr.bf16.gmra.mrb[12].mxu0 %v1731_v55 }
  0x40   : > { %1961 = vmatpush3.bf16.msra.mxu0 %v2218_v51  ;;  %2089 = vmatpush3.bf16.msra.mxu1 %v2217_v46 }
  0x41   : > { %1962 = vmatprep.subr.bf16.mxu0 %v2219_v61  ;;  %2090 = vmatprep.subr.bf16.mxu1 %v2220_v59 }
  0x42   : > { %1070 = vmatprep.mubr.bf16.mxu0 %v1759_v63 }
  0x44   : > { %1963 = vmatpush3.bf16.msra.mxu0 %v2221_v0  ;;  %2091 = vmatpush3.bf16.msra.mxu1 %v2220_v59 }
  0x45   : > { %2000 = vmatprep.subr.bf16.mxu0 %v2222_v1  ;;  %2100 = vmatprep.subr.bf16.mxu1 %v2223_v3 }
  0x47   : > { %2093 = vmatmul.mubr.bf16.vlgmr.msra.gmra.mrb[0].mxu1 %v1763_v5  ;;  %1071 = vmatmul.mubr.bf16.vlgmr.msra.gmra.mrb[16].mxu0 %v1758_v7 }
  0x48   : > { %2101 = vmatpush3.bf16.msra.mxu1 %v2223_v3  ;;  %2096 = vmatprep.mubr.bf16.mxu1 %v2623_v4 }
  0x49   : > { %2102 = vmatprep.subr.bf16.mxu1 %v2226_v8  ;;  %2001 = vmatpush3.bf16.msra.mxu0 %v2224_v62 }
  0x4a   : > { %1078 = vmatprep.mubr.bf16.mxu0 %v2635_v2  ;;  %2002 = vmatprep.subr.bf16.mxu0 %v2225_v15 }
  0x4c   : > { %2103 = vmatpush3.bf16.msra.mxu1 %v2226_v8 }
  0x4d   : > { %2104 = vmatprep.subr.bf16.mxu1 %v2229_v53  ;;  %2003 = vmatpush3.bf16.msra.mxu0 %v2227_v6 }
  0x4e   : > { %2004 = vmatprep.subr.bf16.mxu0 %v2228_v23 }
  0x4f   : > { %2097 = vmatmul.mubr.bf16.gmra.mrb[4].mxu1 %v1769_v44  ;;  %1079 = vmatmul.mubr.bf16.gmra.mrb[20].mxu0 %v1761_v9 }
  0x50   : > { %2105 = vmatpush3.bf16.msra.mxu1 %v2229_v53  ;;  %2116 = vmatprep.mubr.bf16.mxu1 %v1763_v5 }
  0x51   : > { %2106 = vmatprep.subr.bf16.mxu1 %v2232_v11  ;;  %2005 = vmatpush3.bf16.msra.mxu0 %v2230_v12 }
  0x52   : > { %1086 = vmatprep.mubr.bf16.mxu0 %v1765_v13  ;;  %2006 = vmatprep.subr.bf16.mxu0 %v2231_v14 }
  0x54   : > { %2107 = vmatpush3.bf16.msra.mxu1 %v2232_v11 }
  0x55   : > { %2108 = vmatprep.subr.bf16.mxu1 %v2235_v54  ;;  %2007 = vmatpush3.bf16.msra.mxu0 %v2233_v60 }
  0x56   : > { %2008 = vmatprep.subr.bf16.mxu0 %v2234_v29 }
  0x57   : > { %1087 = vmatmul.mubr.bf16.gmra.mrb[24].mxu0 %v1764_v16 }
  0x58   : > { %2109 = vmatpush3.bf16.msra.mxu1 %v2235_v54  ;;  %1094 = vmatprep.mubr.bf16.mxu0 %v1768_v19 }
  0x59   : > { %2110 = vmatprep.subr.bf16.mxu1 %v2238_v17  ;;  %2009 = vmatpush3.bf16.msra.mxu0 %v2236_v18 }
  0x5a   : > { %2010 = vmatprep.subr.bf16.mxu0 %v2237_v20 }
  0x5c   : > { %2111 = vmatpush3.bf16.msra.mxu1 %v2238_v17 }
  0x5d   : > { %2112 = vmatprep.subr.bf16.mxu1 %v2241_v10  ;;  %2011 = vmatpush3.bf16.msra.mxu0 %v2239_v56 }
  0x5e   : > { %2012 = vmatprep.subr.bf16.mxu0 %v2240_v21 }
  0x5f   : > { %1095 = vmatmul.mubr.bf16.gmra.mrb[28].mxu0 %v1767_v22 }
  0x60   : > { %2113 = vmatpush3.bf16.msra.mxu1 %v2241_v10  ;;  %1399 = vmatprep.mubr.bf16.mxu0 %v2635_v2 }
  0x61   : > { %2114 = vmatprep.subr.bf16.mxu1 %v2244_v24  ;;  %2013 = vmatpush3.bf16.msra.mxu0 %v2242_v25 }
  0x62   : > { %2014 = vmatprep.subr.bf16.mxu0 %v2243_v26 }
  0x64   : > { %2115 = vmatpush3.bf16.msra.mxu1 %v2244_v24 }
  0x65   : > { %2015 = vmatpush3.bf16.msra.mxu0 %v2245_v57 }
  0x67   : > { %2117 = vmatmul.mubr.bf16.vlgmr.msra.gmra.mrb[0].mxu1 %v2623_v4 }
  0x68   : > { %2120 = vmatprep.mubr.bf16.mxu1 %v1769_v44  ;;  %1400 = vmatmul.mubr.bf16.vlgmr.msra.gmra.mrb[32].mxu0 %v1761_v9 }
  0x69   : > { %1407 = vmatprep.mubr.bf16.mxu0 %v1765_v13 }
  0x6f   : > { %2121 = vmatmul.mubr.bf16.gmra.mrb[4].mxu1 %v1844_v27 }
  0x70   : > { %1408 = vmatmul.mubr.bf16.gmra.mrb[36].mxu0 %v1764_v16 }
  0x71   : > { %1415 = vmatprep.mubr.bf16.mxu0 %v1768_v19 }
  0x78   : > { %1416 = vmatmul.mubr.bf16.gmra.mrb[40].mxu0 %v1767_v22 }
  0x79   : > { %1423 = vmatprep.mubr.bf16.mxu0 %v1843_v28 }
  0x80   : > { %1424 = vmatmul.mubr.bf16.gmra.mrb[44].mxu0 %v2580_v43 }
  0xfa   : > { %v1912_v30 = vpop.f32.mrb[0].mxu0 }
  0xfb   : > { %v1913_v31 = vpop.f32.mrb[1].mxu0 }
  0xfc   : > { %v1914_v32 = vadd.f32 %v1913_v31, %v1912_v30  ;;  %v1915_v33 = vpop.f32.mrb[2].mxu0 }
  0xfd   : > { %v1916_v34 = vpop.f32.mrb[3].mxu0 }
  0xfe   : > { %v1917_v35 = vadd.f32 %v1916_v34, %v1915_v33 }
 0x102   : > { %v1918_v38 = vpop.f32.mrb[4].mxu0 }
 0x103   : > { %v1919_v37 = vpop.f32.mrb[5].mxu0 }
 0x104   : > { %v1920_v36 = vadd.f32 %v1919_v37, %v1918_v38  ;;  %v1921_v39 = vpop.f32.mrb[6].mxu0 }
 0x105   : > { %v1922_v42 = vpop.f32.mrb[7].mxu0 }
 0x106   : > { %v1923_v40 = vadd.f32 %v1922_v42, %v1921_v39 }
 0x10a   : > { %v1924_v46 = vpop.f32.mrb[8].mxu0 }
 0x10b   : > { %v1925_v41 = vpop.f32.mrb[9].mxu0 }
 0x10c   : > { %v1926_v47 = vadd.f32 %v1925_v41, %v1924_v46  ;;  %v1927_v45 = vpop.f32.mrb[10].mxu0 }
 0x10d   : > { %v1928_v48 = vpop.f32.mrb[11].mxu0 }
 0x10e   : > { %v1929_v49 = vadd.f32 %v1928_v48, %v1927_v45 }
 0x112   : > { %v1930_v50 = vpop.f32.mrb[12].mxu0 }
 0x113   : > { %v1931_v43 = vpop.f32.mrb[13].mxu0 }
 0x114   : > { %v1932_v51 = vadd.f32 %v1931_v43, %v1930_v50  ;;  %v1933_v52 = vpop.f32.mrb[14].mxu0 }
 0x115   : > { %v1934_v55 = vpop.f32.mrb[15].mxu0 }
 0x116   : > { %v1935_v61 = vadd.f32 %v1934_v55, %v1933_v52 }
 0x11a   : > { %v1964_v58 = vpop.f32.mrb[16].mxu0 }
 0x11b   : > { %v1965_v59 = vpop.f32.mrb[17].mxu0 }
 0x11c   : > { %v1966_v63 = vadd.f32 %v1965_v59, %v1964_v58  ;;  %v1967_v0 = vpop.f32.mrb[18].mxu0 }
 0x11d   : > { %v1968_v1 = vpop.f32.mrb[19].mxu0 }
 0x11e   : > { %v2127_v3 = vadd.f32 %v1966_v63, %v1914_v32  ;;  %v1969_v5 = vadd.f32 %v1968_v1, %v1967_v0 }
 0x120   : > { %v2133_v4 = vadd.f32 %v1969_v5, %v1917_v35 }
 0x122   : > { %v1970_v7 = vpop.f32.mrb[20].mxu0 }
 0x123   : > { %v1971_v8 = vpop.f32.mrb[21].mxu0 }
 0x124   : > { %v1972_v62 = vadd.f32 %v1971_v8, %v1970_v7  ;;  %v1973_v2 = vpop.f32.mrb[22].mxu0 }
 0x125   : > { %v1974_v15 = vpop.f32.mrb[23].mxu0 }
 0x126   : > { %v2124_v53 = vadd.f32 %v1972_v62, %v1920_v36  ;;  %v1975_v6 = vadd.f32 %v1974_v15, %v1973_v2 }
 0x128   : > { %v2130_v23 = vadd.f32 %v1975_v6, %v1923_v40 }
 0x12a   : > { %v1976_v44 = vpop.f32.mrb[24].mxu0 }
 0x12b   : > { %v1977_v9 = vpop.f32.mrb[25].mxu0 }
 0x12c   : > { %v1978_v11 = vadd.f32 %v1977_v9, %v1976_v44  ;;  %v1979_v12 = vpop.f32.mrb[26].mxu0 }
 0x12d   : > { %v1980_v13 = vpop.f32.mrb[27].mxu0 }
 0x12e   : > { %v2139_v14 = vadd.f32 %v1978_v11, %v1926_v47  ;;  %v1981_v54 = vadd.f32 %v1980_v13, %v1979_v12 }
 0x130   : > { %v2145_v60 = vadd.f32 %v1981_v54, %v1929_v49 }
 0x132   : > { %v1982_v29 = vpop.f32.mrb[28].mxu0 }
 0x133   : > { %v1983_v16 = vpop.f32.mrb[29].mxu0 }
 0x134   : > { %v1984_v17 = vadd.f32 %v1983_v16, %v1982_v29  ;;  %v1985_v18 = vpop.f32.mrb[30].mxu0 }
 0x135   : > { %v1986_v19 = vpop.f32.mrb[31].mxu0 }
 0x136   : > { %v2719_v20 = vadd.f32 %v1984_v17, %v1932_v51  ;;  %v1987_v10 = vadd.f32 %v1986_v19, %v1985_v18 }
 0x138   : > { %v2721_v56 = vadd.f32 %v1987_v10, %v1935_v61 }
 0x13a   : > { %v2118_v21 = vpop.f32.mrb[0].mxu1 }
 0x13b   : > { %v1466_v22 = vpop.f32.mrb[1].mxu1  ;;  %v2016_v24 = vpop.f32.mrb[32].mxu0 }
 0x13c   : > { %v2119_v25 = vpop.f32.mrb[2].mxu1  ;;  %v2017_v26 = vpop.f32.mrb[33].mxu0 }
 0x13d   : > { %v1469_v57 = vpop.f32.mrb[3].mxu1  ;;  %v2018_v27 = vadd.f32 %v2017_v26, %v2016_v24  ;;  %v2019_v28 = vpop.f32.mrb[34].mxu0 }
 0x13e   : > { %v2020_v30 = vpop.f32.mrb[35].mxu0 }
 0x13f   : > { %v2128_v31 = vadd.f32 %v2127_v3, %v2018_v27  ;;  %v2021_v32 = vadd.f32 %v2020_v30, %v2019_v28 }
 0x141   : > { %v2129_v33 = vadd.f32 %v2128_v31, %v1466_v22  ;;  %v2134_v34 = vadd.f32 %v2133_v4, %v2021_v32 }
 0x142   : > { %v2122_v35 = vpop.f32.mrb[4].mxu1 }
 0x143   : > { %v1482_v38 = vpop.f32.mrb[5].mxu1  ;;  %v2135_v37 = vadd.f32 %v2134_v34, %v1469_v57  ;;  %v2022_v36 = vpop.f32.mrb[36].mxu0  ;;  %v1534_v42 = vmul.f32 %v2129_v33, %v2129_v33 }
 0x144   : > { %v2123_v39 = vpop.f32.mrb[6].mxu1  ;;  %v2023_v40 = vpop.f32.mrb[37].mxu0 }
 0x145   : > { %v1485_v46 = vpop.f32.mrb[7].mxu1  ;;  %v1876_v41 = vpack.c.bf16 %v2135_v37, %v2129_v33  ;;  %v1521_v47 = vadd.f32 %v2135_v37, %v2129_v33  ;;  %v1535_v45 = vmul.f32 %v2135_v37, %v2135_v37  ;;  %v2024_v48 = vadd.f32 %v2023_v40, %v2022_v36  ;;  %v2025_v49 = vpop.f32.mrb[38].mxu0 }
 0x146   : > { %v2026_v50 = vpop.f32.mrb[39].mxu0 }
 0x147   : > { %1877 = vst [vmem:[%s2727_s4] sm:$0xff] %v1876_v41   ;;  %v1542_v43 = vadd.f32 %v1535_v45, %v1534_v42  ;;  %v2125_v51 = vadd.f32 %v2124_v53, %v2024_v48  ;;  %v2027_v52 = vadd.f32 %v2026_v50, %v2025_v49  ;;  %v2255_v42 = vmov 1966171168  }
 0x148   : > { %v1559_v40 = vunpack.c.l.s4 %v2255_v42 }
 0x149   : > { %v2126_v55 = vadd.f32 %v2125_v51, %v2118_v21  ;;  %v2131_v61 = vadd.f32 %v2130_v23, %v2027_v52 }
 0x14b   : > { %v1522_v58 = vadd.f32 %v2126_v55, %v1521_v47  ;;  %v1536_v59 = vmul.f32 %v2126_v55, %v2126_v55  ;;  %v2132_v63 = vadd.f32 %v2131_v61, %v2119_v25  ;;  %v2028_v0 = vpop.f32.mrb[40].mxu0 }
 0x14c   : > { %v2029_v1 = vpop.f32.mrb[41].mxu0 }
 0x14d   : > { %v1543_v3 = vadd.f32 %v1542_v43, %v1536_v59  ;;  %v1881_v5 = vpack.c.bf16 %v2132_v63, %v2126_v55  ;;  %v1523_v4 = vadd.f32 %v2132_v63, %v1522_v58  ;;  %v1537_v7 = vmul.f32 %v2132_v63, %v2132_v63  ;;  %v2031_v8 = vpop.f32.mrb[42].mxu0 }
 0x14e   : > { %v2030_v62 = vadd.f32 %v2029_v1, %v2028_v0  ;;  %v2032_v2 = vpop.f32.mrb[43].mxu0 }
 0x14f   : > { %1893 = vst [vmem:[%s2727_s4 + $0x8] sm:$0xff] %v1881_v5   ;;  %v1544_v15 = vadd.f32 %v1543_v3, %v1537_v7  ;;  %v2033_v6 = vadd.f32 %v2032_v2, %v2031_v8 }
 0x150   : > { %v2140_v53 = vadd.f32 %v2139_v14, %v2030_v62 }
 0x151   : > { %v2146_v44 = vadd.f32 %v2145_v60, %v2033_v6 }
 0x152   : > { %v2141_v9 = vadd.f32 %v2140_v53, %v1482_v38 }
 0x153   : > { %v2147_v23 = vadd.f32 %v2146_v44, %v1485_v46  ;;  %v2034_v11 = vpop.f32.mrb[44].mxu0 }
 0x154   : > { %v1524_v12 = vadd.f32 %v2141_v9, %v1523_v4  ;;  %v1538_v13 = vmul.f32 %v2141_v9, %v2141_v9  ;;  %v2035_v54 = vpop.f32.mrb[45].mxu0 }
 0x155   : > { %v1886_v29 = vpack.c.bf16 %v2147_v23, %v2141_v9  ;;  %v1539_v16 = vmul.f32 %v2147_v23, %v2147_v23  ;;  %v2036_v17 = vadd.f32 %v2035_v54, %v2034_v11  ;;  %v2037_v18 = vpop.f32.mrb[46].mxu0 }
 0x156   : > { %v1545_v19 = vadd.f32 %v1544_v15, %v1538_v13  ;;  %v1525_v10 = vadd.f32 %v2147_v23, %v1524_v12  ;;  %v2038_v21 = vpop.f32.mrb[47].mxu0 }
 0x157   : > { %1894 = vst [vmem:[%s2727_s4 + $0x10] sm:$0xff] %v1886_v29   ;;  %v2137_v22 = vadd.f32 %v2719_v20, %v2036_v17  ;;  %v2039_v24 = vadd.f32 %v2038_v21, %v2037_v18 }
 0x158   : > { %v1546_v14 = vadd.f32 %v1545_v19, %v1539_v16 }
 0x159   : > { %v2138_v60 = vadd.f32 %v2137_v22, %v2122_v35  ;;  %v2143_v25 = vadd.f32 %v2721_v56, %v2039_v24  ;;  %v1561_v35 = vlaneseq }
 0x15b   : > { %v1526_v26 = vadd.f32 %v2138_v60, %v1525_v10  ;;  %v1540_v57 = vmul.f32 %v2138_v60, %v2138_v60  ;;  %v2144_v27 = vadd.f32 %v2143_v25, %v2123_v39  ;;  %v1560_v39 = vunpack.c.0.s8 %v1559_v40 }
 0x15c   : > { %v1562_v45 = vshrl.u32 %v1561_v35, 7  ;;  %vm1575_vm6 = vcmp.lt.s32.totalorder %v1561_v35, 256 }
 0x15d   : > { %v1547_v28 = vadd.f32 %v1546_v14, %v1540_v57  ;;  %v1891_v30 = vpack.c.bf16 %v2144_v27, %v2138_v60  ;;  %v1527_v31 = vadd.f32 %v2144_v27, %v1526_v26  ;;  %v1541_v32 = vmul.f32 %v2144_v27, %v2144_v27 }
 0x15e   : > { %v1563_v43 = vsub.s32 %v1560_v39, %v1562_v45 }
 0x15f   : > { %1895 = vst [vmem:[%s2727_s4 + $0x18] sm:$0xff] %v1891_v30   ;;  %v1528_v33 = vrot.slane %v1527_v31, 4  ;;  %v1548_v34 = vadd.f32 %v1547_v28, %v1541_v32 }
 0x161   : > { %v1529_v38 = vadd.f32 %v1528_v33, %v1527_v31  ;;  %v1549_v37 = vrot.slane %v1548_v34, 4 }
 0x163   : > { %v1530_v36 = vrot.slane %v1529_v38, 2  ;;  %v1550_v20 = vadd.f32 %v1549_v37, %v1548_v34 }
 0x165   : > { %v1531_v46 = vadd.f32 %v1530_v36, %v1529_v38  ;;  %v1551_v56 = vrot.slane %v1550_v20, 2 }
 0x167   : > { %v1532_v41 = vrot.slane %v1531_v46, 1  ;;  %v1552_v47 = vadd.f32 %v1551_v56, %v1550_v20 }
 0x169   : > { %v1553_v48 = vrot.slane %v1552_v47, 1  ;;  %v1533_v49 = vadd.f32 %v1532_v41, %v1531_v46 }
 0x16b   : > { %v1554_v50 = vadd.f32 %v1553_v48, %v1552_v47 }
 0x16d   : > { %v1557_v51 = vcombine.low %v1533_v49, %v1554_v50 }
 0x16f   : > { %v1564_v52 = vrot.slane %v1557_v51, %v1563_v43 }
 0x171   : > { %v1571_v55 = vrot.slane %v1564_v52, %v1563_v43 }
 0x173   : > { %1577 = vst.msk [vmem:[%s263_s25] sm:$0x3] %vm1575_vm6, %v1571_v55 }
 0x174 PF: > { %s18_s21 = sadd.s32 1, %s2252_s21  }
 0x175   : > { %p15_p4 = scmp.ge.s32.totalorder %s18_s21, 4  }
 0x177   :  { %17 = sbr.rel (!%p15_p4) target bundleno = 1 (0x1), region = 84 }

// kernel: resnet_block_3d.4
= control target key start
LH: loop header
LB: loop body
LE: loop exit
PB: predicated region body
PF: predicated region fallthrough
CT: control target
= control target key end

     0   :  { %s2379_s23 = smov 0   ;;  %s2854_s0 = inlined_call_operand.vmem [shape: bf16[2,8,8,128], index: 0, kind: input, shape index: {}]   ;;  %s2855_s1 = inlined_call_operand.vmem [shape: bf16[3,384,128], index: 1, kind: input, shape index: {}]   ;;  %s2856_s2 = inlined_call_operand.vmem [shape: f32[1,128], index: 2, kind: input, shape index: {}]   ;;  %s2857_s3 = inlined_call_operand.vmem [shape: f32[1,128], index: 3, kind: input, shape index: {}]   ;;  %s2858_s4 = inlined_call_operand.<no memory space> [shape: f32[1], index: 4, kind: input, shape index: {}]   ;;  %s2859_s5 = inlined_call_operand.vmem [shape: bf16[2,8,8,128], index: 5, kind: output, shape index: {0}]   ;;  %s2860_s6 = inlined_call_operand.vmem [shape: f32[2,1,256], index: 6, kind: output, shape index: {1}]  }
   0x1   :  { %12 = sst [smem:[#allocation2]] %s2858_s4 }
   0x2 LB: > { %s1728_s24 = sadd.s32 4294967295, %s2337_s23   ;;  %p1732_p0 = scmp.ge.s32.totalorder %s2337_s23, 1  ;;  %s2337_s23 = sphi %s2379_s23, %s18_s23  }
   0x3   : > { %p216_p1 = scmp.lt.s32.totalorder %s2337_s23, 3 }
   0x5   : > { %p217_p2 = pnand %p1732_p0, %p216_p1 }
   0x6   : > { %v2259_v0 = vld [vmem:[%s2855_s1 + $0x100] sm:$0xff] (!%p217_p2)   ;;  %v2262_v3 = vld [vmem:[%s2855_s1 + $0x108] sm:$0xff] (!%p217_p2)   ;;  %v2265_v6 = vld [vmem:[%s2855_s1 + $0x110] sm:$0xff] (!%p217_p2)   ;;  %p250_p3 = scmp.lt.s32.totalorder (!%p217_p2), %s1728_s24, 1  ;;  %s273_s25 = sld [smem:[#allocation2]] (!%p217_p2)  ;;  %vm409_vm0 = vcmask (!%p217_p2), 1040384  }
   0x7   : > { %220 = sbr.rel (%p217_p2) target bundleno = 384 (0x180), region = 40  ;;  %v2260_v1 = vld [vmem:[%s2855_s1 + $0x140] sm:$0xff] (!%p217_p2)   ;;  %1981 = vmatprep.subr.bf16.mxu0 (!%p217_p2), %v2259_v0  ;;  %v2263_v4 = vld [vmem:[%s2855_s1 + $0x148] sm:$0xff] (!%p217_p2)   ;;  %v2266_v7 = vld [vmem:[%s2855_s1 + $0x150] sm:$0xff] (!%p217_p2)   ;;  %vm420_vm1 = vcmask (!%p217_p2), 1044480  }
   0x8   : > { %v2261_v2 = vld [vmem:[%s2855_s1 + $0xc0] sm:$0xff] (!%p217_p2)   ;;  %2137 = vmatprep.subr.bf16.mxu1 (!%p217_p2), %v2260_v1  ;;  %v2264_v5 = vld [vmem:[%s2855_s1 + $0xc8] sm:$0xff] (!%p217_p2)   ;;  %v2267_v8 = vld [vmem:[%s2855_s1 + $0xd0] sm:$0xff] (!%p217_p2)   ;;  %vm410_vm6 = vsmask.f32 (!%p217_p2), 256 }
   0x9   : > { %1982 = vmatpush3.bf16.msra.mxu0 (!%p217_p2), %v2261_v2  ;;  %2138 = vmatpush3.bf16.msra.mxu1 (!%p217_p2), %v2260_v1  ;;  %v2268_v9 = vld [vmem:[%s2855_s1 + $0x118] sm:$0xff] (!%p217_p2)   ;;  %v2271_v12 = vld [vmem:[%s2855_s1 + $0x120] sm:$0xff] (!%p217_p2)   ;;  %v2274_v15 = vld [vmem:[%s2855_s1 + $0x128] sm:$0xff] (!%p217_p2)   ;;  %vm421_vm7 = vsmask.f32 (!%p217_p2), 4352 }
   0xa   : > { %1983 = vmatprep.subr.bf16.mxu0 (!%p217_p2), %v2262_v3  ;;  %2139 = vmatprep.subr.bf16.mxu1 (!%p217_p2), %v2263_v4  ;;  %v2269_v10 = vld [vmem:[%s2855_s1 + $0x158] sm:$0xff] (!%p217_p2)   ;;  %v2272_v13 = vld [vmem:[%s2855_s1 + $0x160] sm:$0xff] (!%p217_p2)   ;;  %v2275_v16 = vld [vmem:[%s2855_s1 + $0x168] sm:$0xff] (!%p217_p2)  }
   0xb   : > { %v2270_v11 = vld [vmem:[%s2855_s1 + $0xd8] sm:$0xff] (!%p217_p2)   ;;  %v2273_v14 = vld [vmem:[%s2855_s1 + $0xe0] sm:$0xff] (!%p217_p2)   ;;  %v2276_v17 = vld [vmem:[%s2855_s1 + $0xe8] sm:$0xff] (!%p217_p2)  }
   0xc   : > { %v2277_v18 = vld [vmem:[%s2855_s1 + $0x130] sm:$0xff] (!%p217_p2)   ;;  %v2468_v22 = vld [vmem:[%s2856_s2] ss:$0 sm:$0xff] (!%p217_p2)  ;;  %v2280_v24 = vld [vmem:[%s2855_s1 + $0x138] sm:$0xff] (!%p217_p2)   ;;  %v2499_v40 = vstv (!%p217_p2), %s273_s25 }
   0xd   : > { %1984 = vmatpush3.bf16.msra.mxu0 (!%p217_p2), %v2264_v5  ;;  %2140 = vmatpush3.bf16.msra.mxu1 (!%p217_p2), %v2263_v4  ;;  %v2278_v19 = vld [vmem:[%s2855_s1 + $0x170] sm:$0xff] (!%p217_p2)   ;;  %v2281_v25 = vld [vmem:[%s2855_s1 + $0x178] sm:$0xff] (!%p217_p2)   ;;  %v2480_v28 = vld [vmem:[%s2857_s3] ss:$0 sm:$0xff] (!%p217_p2) }
   0xe   : > { %1985 = vmatprep.subr.bf16.mxu0 %v2265_v6  ;;  %2141 = vmatprep.subr.bf16.mxu1 %v2266_v7  ;;  %s2866_s24 = smov (!%p250_p3, %s1728_s24), 1  ;;  %v2279_v20 = vld [vmem:[%s2855_s1 + $0xf0] sm:$0xff]   ;;  %v2282_v31 = vld [vmem:[%s2855_s1 + $0xf8] sm:$0xff]   ;;  %v2283_v35 = vld [vmem:[%s2855_s1 + $0x40] sm:$0xff]  }
   0xf   : > { %s1937_s11 = sshll.u32 %s2866_s24, 5  ;;  %v2497_v39 = vld [vmem:[%s2855_s1 + $0x80] sm:$0xff]   ;;  %vm2510_vm8 = vmand %vm409_vm0, %vm410_vm6 }
  0x10   : > { %s2459_s20 = scalar_lea.vmem %s2854_s0, %s1937_s11  ;;  %vm2516_vm9 = vmand %vm420_vm1, %vm421_vm7 }
  0x11   : > { %1986 = vmatpush3.bf16.msra.mxu0 %v2267_v8  ;;  %2142 = vmatpush3.bf16.msra.mxu1 %v2266_v7  ;;  %v1940_v21 = vld [vmem:[%s2459_s20] sm:$0xff]   ;;  %v1975_v23 = vld [vmem:[%s2459_s20 + $0x8] sm:$0xff]   ;;  %v1976_v7 = vld [vmem:[%s2459_s20 + $0x10] sm:$0xff]  }
  0x12   : > { %1987 = vmatprep.subr.bf16.mxu0 %v2268_v9  ;;  %2143 = vmatprep.subr.bf16.mxu1 %v2269_v10  ;;  %v1941_v26 = vunpack.c.l.bf16 %v1940_v21  ;;  %v1942_v27 = vunpack.c.h.bf16 %v1940_v21  ;;  %v1945_v29 = vunpack.c.l.bf16 %v1975_v23  ;;  %v1946_v30 = vunpack.c.h.bf16 %v1975_v23 }
  0x14   : > { %v290_v32 = vmul.f32 %v1941_v26, %v2468_v22  ;;  %v291_v33 = vmul.f32 %v1942_v27, %v2468_v22  ;;  %v292_v34 = vmul.f32 %v1945_v29, %v2468_v22  ;;  %v293_v36 = vmul.f32 %v1946_v30, %v2468_v22 }
  0x15   : > { %1988 = vmatpush3.bf16.msra.mxu0 %v2270_v11  ;;  %2144 = vmatpush3.bf16.msra.mxu1 %v2269_v10 }
  0x16   : > { %1989 = vmatprep.subr.bf16.mxu0 %v2271_v12  ;;  %2145 = vmatprep.subr.bf16.mxu1 %v2272_v13  ;;  %v304_v37 = vadd.f32 %v2480_v28, %v290_v32  ;;  %v305_v38 = vadd.f32 %v2480_v28, %v291_v33  ;;  %v306_v41 = vadd.f32 %v2480_v28, %v292_v34  ;;  %v1949_v12 = vunpack.c.l.bf16 %v1976_v7 }
  0x17   : > { %v307_v42 = vadd.f32 %v2480_v28, %v293_v36 }
  0x18   : > { %vm312_vm2 = vcmp.ge.f32.partialorder %v304_v37, 0.0  ;;  %vm313_vm3 = vcmp.ge.f32.partialorder %v305_v38, 0.0  ;;  %v321_v43 = vmul.f32 %v2499_v40, %v304_v37  ;;  %v322_v44 = vmul.f32 %v2499_v40, %v305_v38 }
  0x19   : > { %1990 = vmatpush3.bf16.msra.mxu0 %v2273_v14  ;;  %2146 = vmatpush3.bf16.msra.mxu1 %v2272_v13  ;;  %vm314_vm4 = vcmp.ge.f32.partialorder %v306_v41, 0.0  ;;  %v323_v45 = vmul.f32 %v2499_v40, %v306_v41  ;;  %vm315_vm5 = vcmp.ge.f32.partialorder %v307_v42, 0.0  ;;  %v324_v46 = vmul.f32 %v2499_v40, %v307_v42 }
  0x1a   : > { %1991 = vmatprep.subr.bf16.mxu0 %v2274_v15  ;;  %2147 = vmatprep.subr.bf16.mxu1 %v2275_v16  ;;  %v329_v47 = vsel %vm312_vm2, %v304_v37, %v321_v43  ;;  %v330_v48 = vsel %vm313_vm3, %v305_v38, %v322_v44  ;;  %v2285_v37 = vld [vmem:[%s2855_s1] sm:$0xff]   ;;  %v2287_v38 = vld [vmem:[%s2855_s1 + $0x88] sm:$0xff]  }
  0x1b   : > { %v337_v49 = vpack.c.bf16 %v329_v47, %v329_v47  ;;  %v338_v50 = vpack.c.bf16 %v330_v48, %v330_v48  ;;  %v331_v51 = vsel %vm314_vm4, %v306_v41, %v323_v45  ;;  %v332_v52 = vsel %vm315_vm5, %v307_v42, %v324_v46 }
  0x1c   : > { %v339_v53 = vpack.c.bf16 %v331_v51, %v331_v51  ;;  %v340_v54 = vpack.c.bf16 %v332_v52, %v332_v52  ;;  %v294_v47 = vmul.f32 %v1949_v12, %v2468_v22  ;;  %v2292_v12 = vld [vmem:[%s2855_s1 + $0x58] sm:$0xff]  }
  0x1d   : > { %1992 = vmatpush3.bf16.msra.mxu0 %v2276_v17  ;;  %2148 = vmatpush3.bf16.msra.mxu1 %v2275_v16  ;;  %v346_v55 = vshrl.u32 %v337_v49, 16  ;;  %v349_v56 = vshll.u32 %v337_v49, 16  ;;  %v353_v57 = vshrl.u32 %v338_v50, 16  ;;  %v356_v58 = vshll.u32 %v338_v50, 16  ;;  %v1977_v49 = vld [vmem:[%s2459_s20 + $0x18] sm:$0xff]   ;;  %v2286_v50 = vld [vmem:[%s2855_s1 + $0x48] sm:$0xff]   ;;  %s2839_s20 = scalar_lea.vmem %s2859_s5, %s1937_s11 }
  0x1e   : > { %1993 = vmatprep.subr.bf16.mxu0 %v2277_v18  ;;  %2149 = vmatprep.subr.bf16.mxu1 %v2278_v19  ;;  %v360_v59 = vshrl.u32 %v339_v53, 16  ;;  %v363_v60 = vshll.u32 %v339_v53, 16  ;;  %v367_v61 = vshrl.u32 %v340_v54, 16  ;;  %v370_v62 = vshll.u32 %v340_v54, 16  ;;  %s1737_s11 = sshll.u32 %s2866_s24, 1 }
  0x1f   : > { %v348_v63 = vrot.slane %v346_v55, 7  ;;  %v355_v0 = vrot.slane %v353_v57, 7  ;;  %v1953_v53 = vunpack.c.l.bf16 %v1977_v49  ;;  %v1954_v54 = vunpack.c.h.bf16 %v1977_v49  ;;  %s263_s4 = scalar_lea.vmem %s2860_s6, %s1737_s11 }
  0x20   : > { %v362_v2 = vrot.slane %v360_v59, 7  ;;  %v369_v3 = vrot.slane %v367_v61, 7  ;;  %v308_v55 = vadd.f32 %v2480_v28, %v294_v47  ;;  %v2289_v61 = vld [vmem:[%s2855_s1 + $0x50] sm:$0xff]  }
  0x21   : > { %1994 = vmatpush3.bf16.msra.mxu0 %v2279_v20  ;;  %2150 = vmatpush3.bf16.msra.mxu1 %v2278_v19  ;;  %v351_v4 = vor.u32 %v349_v56, %v348_v63  ;;  %v358_v5 = vor.u32 %v356_v58, %v355_v0  ;;  %v2290_v58 = vld [vmem:[%s2855_s1 + $0x90] sm:$0xff]   ;;  %v296_v59 = vmul.f32 %v1953_v53, %v2468_v22  ;;  %v2298_v53 = vld [vmem:[%s2855_s1 + $0x68] sm:$0xff]  }
  0x22   : > { %1995 = vmatprep.subr.bf16.mxu0 %v2280_v24  ;;  %2151 = vmatprep.subr.bf16.mxu1 %v2281_v25  ;;  %v365_v8 = vor.u32 %v363_v60, %v362_v2  ;;  %v372_v9 = vor.u32 %v370_v62, %v369_v3  ;;  %v297_v60 = vmul.f32 %v1954_v54, %v2468_v22  ;;  %vm316_vm10 = vcmp.ge.f32.partialorder %v308_v55, 0.0 }
  0x23   : > { %v412_v10 = vsel %vm2510_vm8, 0, %v351_v4  ;;  %v413_v11 = vsel %vm2510_vm8, 0, %v358_v5  ;;  %v325_v62 = vmul.f32 %v2499_v40, %v308_v55 }
  0x24   : > { %v2527_v13 = vsel %vm2516_vm9, %v412_v10, 0  ;;  %v2531_v14 = vsel %vm2516_vm9, %v413_v11, 0  ;;  %v414_v15 = vsel %vm2510_vm8, 0, %v365_v8  ;;  %v415_v16 = vsel %vm2510_vm8, 0, %v372_v9  ;;  %v2293_v8 = vld [vmem:[%s2855_s1 + $0x98] sm:$0xff]  }
  0x25   : > { %1996 = vmatpush3.bf16.msra.mxu0 %v2282_v31  ;;  %2152 = vmatpush3.bf16.msra.mxu1 %v2281_v25  ;;  %v439_v17 = vshrl.u32 %v2527_v13, 16  ;;  %v441_v18 = vshll.u32 %v2527_v13, 16  ;;  %v446_v19 = vshrl.u32 %v2531_v14, 16  ;;  %v448_v20 = vshll.u32 %v2531_v14, 16 }
  0x26   : > { %2033 = vmatprep.subr.bf16.mxu0 %v2283_v35  ;;  %2161 = vmatprep.subr.bf16.mxu1 %v2497_v39  ;;  %v2543_v21 = vsel %vm2516_vm9, %v414_v15, 0  ;;  %v504_v23 = vrot.slane %v2527_v13, 1  ;;  %v505_v24 = vrot.slane %v2531_v14, 1  ;;  %v1950_v25 = vunpack.c.h.bf16 %v1976_v7  ;;  %v2291_v7 = vld [vmem:[%s2855_s1 + $0x10] sm:$0xff]  }
  0x27   : > { %v443_v26 = vrot.slane %v441_v18, 1  ;;  %v450_v27 = vrot.slane %v448_v20, 1  ;;  %v506_v29 = vrot.slane %v2543_v21, 1  ;;  %v2550_v30 = vsel %vm2516_vm9, %v415_v16, 0 }
  0x28   : > { %v1790_v31 = vcombine.low %v504_v23, %v505_v24  ;;  %v507_v32 = vrot.slane %v2550_v30, 1  ;;  %v453_v33 = vshrl.u32 %v2543_v21, 16  ;;  %v455_v34 = vshll.u32 %v2543_v21, 16 }
  0x29   : > { %v2559_v35 = vor.u32 %v443_v26, %v439_v17  ;;  %v2561_v36 = vor.u32 %v450_v27, %v446_v19  ;;  %v460_v41 = vshrl.u32 %v2550_v30, 16  ;;  %v1788_v42 = vcombine.low %v2527_v13, %v2531_v14  ;;  %v2296_v27 = vld [vmem:[%s2855_s1 + $0xa0] sm:$0xff]  }
  0x2a   : > { %2153 = vmatprep.mubr.bf16.mxu1 %v1790_v31  ;;  %v1793_v43 = vcombine.low %v506_v29, %v507_v32  ;;  %v457_v44 = vrot.slane %v455_v34, 1  ;;  %v462_v45 = vshll.u32 %v2550_v30, 16  ;;  %v295_v48 = vmul.f32 %v1950_v25, %v2468_v22  ;;  %v2294_v25 = vld [vmem:[%s2855_s1 + $0x18] sm:$0xff]  }
  0x2b   : > { %v1789_v46 = vcombine.low %v2559_v35, %v2561_v36  ;;  %v310_v22 = vadd.f32 %v2480_v28, %v296_v59  ;;  %v311_v2 = vadd.f32 %v2480_v28, %v297_v60  ;;  %v1791_v3 = vcombine.low %v2543_v21, %v2550_v30  ;;  %v2300_v60 = vld [vmem:[%s2855_s1 + $0x28] sm:$0xff]  }
  0x2c   : > { %2154 = vmatmul.mubr.bf16.vlgmr.msra.gmra.mrb[0].mxu1 %v1793_v43  ;;  %v2585_v51 = vor.u32 %v457_v44, %v453_v33  ;;  %v464_v52 = vrot.slane %v462_v45, 1  ;;  %v309_v56 = vadd.f32 %v2480_v28, %v295_v48  ;;  %v333_v4 = vsel %vm316_vm10, %v308_v55, %v325_v62  ;;  %v2297_v43 = vld [vmem:[%s2855_s1 + $0x20] sm:$0xff]   ;;  %v2299_v48 = vld [vmem:[%s2855_s1 + $0xa8] sm:$0xff]   ;;  %v2302_v62 = vld [vmem:[%s2855_s1 + $0xb0] sm:$0xff]  }
  0x2d   : > { %836 = vmatprep.mubr.bf16.mxu0 %v1789_v46  ;;  %2162 = vmatpush3.bf16.msra.mxu1 %v2497_v39  ;;  %v2288_v39 = vld [vmem:[%s2855_s1 + $0x8] sm:$0xff]   ;;  %v341_v9 = vpack.c.bf16 %v333_v4, %v333_v4  ;;  %vm318_vm12 = vcmp.ge.f32.partialorder %v310_v22, 0.0  ;;  %vm319_vm13 = vcmp.ge.f32.partialorder %v311_v2, 0.0  ;;  %v327_v28 = vmul.f32 %v2499_v40, %v310_v22 }
  0x2e   : > { %837 = vmatmul.mubr.bf16.vlgmr.msra.gmra.mrb[0].mxu0 %v1788_v42  ;;  %2163 = vmatprep.subr.bf16.mxu1 %v2287_v38  ;;  %v2590_v57 = vor.u32 %v464_v52, %v460_v41  ;;  %vm317_vm11 = vcmp.ge.f32.partialorder %v309_v56, 0.0  ;;  %v326_v63 = vmul.f32 %v2499_v40, %v309_v56  ;;  %v328_v11 = vmul.f32 %v2499_v40, %v311_v2 }
  0x2f   : > { %2034 = vmatpush3.bf16.msra.mxu0 %v2285_v37  ;;  %v374_v15 = vshrl.u32 %v341_v9, 16  ;;  %v377_v16 = vshll.u32 %v341_v9, 16  ;;  %v335_v19 = vsel %vm318_vm12, %v310_v22, %v327_v28 }
  0x30   : > { %2035 = vmatprep.subr.bf16.mxu0 %v2286_v50  ;;  %v1792_v0 = vcombine.low %v2585_v51, %v2590_v57  ;;  %v334_v5 = vsel %vm317_vm11, %v309_v56, %v326_v63  ;;  %v336_v20 = vsel %vm319_vm13, %v311_v2, %v328_v11  ;;  %v343_v31 = vpack.c.bf16 %v335_v19, %v335_v19 }
  0x31   : > { %2164 = vmatpush3.bf16.msra.mxu1 %v2287_v38  ;;  %v342_v10 = vpack.c.bf16 %v334_v5, %v334_v5  ;;  %v376_v26 = vrot.slane %v374_v15, 7  ;;  %v344_v33 = vpack.c.bf16 %v336_v20, %v336_v20  ;;  %v2295_v38 = vld [vmem:[%s2855_s1 + $0x60] sm:$0xff]   ;;  %v2339_v63 = vmov 0  }
  0x32   : > { %844 = vmatprep.mubr.bf16.mxu0 %v1792_v0  ;;  %2165 = vmatprep.subr.bf16.mxu1 %v2290_v58  ;;  %v388_v41 = vshrl.u32 %v343_v31, 16  ;;  %v391_v42 = vshll.u32 %v343_v31, 16  ;;  %v2663_v0 = vrot.slane %v2339_v63, 1  ;;  %v2305_v31 = vld [vmem:[%s2855_s1 + $0xb8] sm:$0xff]  }
  0x33   : > { %2036 = vmatpush3.bf16.msra.mxu0 %v2288_v39  ;;  %v381_v17 = vshrl.u32 %v342_v10, 16  ;;  %v384_v18 = vshll.u32 %v342_v10, 16  ;;  %v379_v34 = vor.u32 %v377_v16, %v376_v26  ;;  %v395_v44 = vshrl.u32 %v344_v33, 16 }
  0x34   : > { %2037 = vmatprep.subr.bf16.mxu0 %v2289_v61  ;;  %v398_v45 = vshll.u32 %v344_v33, 16  ;;  %v390_v49 = vrot.slane %v388_v41, 7  ;;  %v1826_v33 = vcombine.low %v2663_v0, %v504_v23  ;;  %v2306_v41 = vld [vmem:[%s2855_s1 + $0x38] sm:$0xff]   ;;  %v2308_v23 = vld [vmem:[%s2855_s1 + $0x200] sm:$0xff]  }
  0x35   : > { %2166 = vmatpush3.bf16.msra.mxu1 %v2290_v58  ;;  %v383_v40 = vrot.slane %v381_v17, 7  ;;  %v416_v46 = vsel %vm2510_vm8, 0, %v379_v34  ;;  %v397_v54 = vrot.slane %v395_v44, 7  ;;  %v2301_v17 = vld [vmem:[%s2855_s1 + $0x70] sm:$0xff]  }
  0x36   : > { %845 = vmatmul.mubr.bf16.gmra.mrb[4].mxu0 %v1791_v3  ;;  %2167 = vmatprep.subr.bf16.mxu1 %v2293_v8  ;;  %v2643_v50 = vsel %vm2516_vm9, %v416_v46, 0  ;;  %v393_v39 = vor.u32 %v391_v42, %v390_v49  ;;  %v1829_v46 = vcombine.low %v505_v24, %v506_v29  ;;  %v1824_v24 = vcombine.low %v2339_v63, %v2527_v13  ;;  %v2314_v29 = vld [vmem:[%s2855_s1 + $0x210] sm:$0xff]   ;;  %v2310_v49 = vld [vmem:[%s2855_s1 + $0x1c8] sm:$0xff]   ;;  %v2317_v13 = vld [vmem:[%s2855_s1 + $0x218] sm:$0xff]  }
  0x37   : > { %2038 = vmatpush3.bf16.msra.mxu0 %v2291_v7  ;;  %v386_v37 = vor.u32 %v384_v18, %v383_v40  ;;  %v467_v55 = vshrl.u32 %v2643_v50, 16  ;;  %v469_v56 = vshll.u32 %v2643_v50, 16  ;;  %v400_v61 = vor.u32 %v398_v45, %v397_v54  ;;  %v2303_v18 = vld [vmem:[%s2855_s1 + $0x30] sm:$0xff]   ;;  %v2312_v54 = vld [vmem:[%s2855_s1 + $0x188] sm:$0xff]  }
  0x38   : > { %2039 = vmatprep.subr.bf16.mxu0 %v2292_v12  ;;  %v508_v3 = vrot.slane %v2643_v50, 1  ;;  %v418_v7 = vsel %vm2510_vm8, 0, %v393_v39  ;;  %v1825_v45 = vcombine.low %v2663_v0, %v2559_v35  ;;  %v1828_v35 = vcombine.low %v2561_v36, %v2585_v51  ;;  %v2313_v36 = vld [vmem:[%s2855_s1 + $0x1d0] sm:$0xff]  }
  0x39   : > { %2168 = vmatpush3.bf16.msra.mxu1 %v2293_v8  ;;  %v417_v47 = vsel %vm2510_vm8, 0, %v386_v37  ;;  %v471_v22 = vrot.slane %v469_v56, 1  ;;  %v419_v8 = vsel %vm2510_vm8, 0, %v400_v61  ;;  %v2679_v28 = vsel %vm2516_vm9, %v418_v7, 0  ;;  %v2315_v56 = vld [vmem:[%s2855_s1 + $0x190] sm:$0xff]   ;;  %v2321_v61 = vld [vmem:[%s2855_s1 + $0x1a0] sm:$0xff]  }
  0x3a   : > { %2169 = vmatprep.subr.bf16.mxu1 %v2296_v27  ;;  %v2647_v52 = vsel %vm2516_vm9, %v417_v47, 0  ;;  %v2683_v11 = vsel %vm2516_vm9, %v419_v8, 0  ;;  %v481_v12 = vshrl.u32 %v2679_v28, 16  ;;  %v483_v15 = vshll.u32 %v2679_v28, 16  ;;  %v2326_v39 = vld [vmem:[%s2855_s1 + $0x230] sm:$0xff]   ;;  %v2330_v7 = vld [vmem:[%s2855_s1 + $0x1b8] sm:$0xff]  }
  0x3b   : > { %2040 = vmatpush3.bf16.msra.mxu0 %v2294_v25  ;;  %v474_v58 = vshrl.u32 %v2647_v52, 16  ;;  %v476_v59 = vshll.u32 %v2647_v52, 16  ;;  %v509_v4 = vrot.slane %v2647_v52, 1  ;;  %v1794_v5 = vcombine.low %v2643_v50, %v2647_v52  ;;  %v2304_v25 = vld [vmem:[%s2855_s1 + $0x78] sm:$0xff]  }
  0x3c   : > { %2041 = vmatprep.subr.bf16.mxu0 %v2295_v38  ;;  %v2673_v9 = vor.u32 %v471_v22, %v467_v55  ;;  %v488_v1 = vshrl.u32 %v2683_v11, 16  ;;  %v490_v16 = vshll.u32 %v2683_v11, 16  ;;  %v510_v20 = vrot.slane %v2679_v28, 1  ;;  %v2320_v55 = vld [vmem:[%s2855_s1 + $0x220] sm:$0xff]   ;;  %v2322_v22 = vld [vmem:[%s2855_s1 + $0x1e8] sm:$0xff]  }
  0x3d   : > { %2170 = vmatpush3.bf16.msra.mxu1 %v2296_v27  ;;  %v478_v2 = vrot.slane %v476_v59, 1  ;;  %v1796_v19 = vcombine.low %v508_v3, %v509_v4  ;;  %v485_v26 = vrot.slane %v483_v15, 1  ;;  %v511_v27 = vrot.slane %v2683_v11, 1  ;;  %v2316_v59 = vld [vmem:[%s2855_s1 + $0x1d8] sm:$0xff]  }
  0x3e   : > { %2171 = vmatprep.subr.bf16.mxu1 %v2299_v48  ;;  %v492_v40 = vrot.slane %v490_v16, 1  ;;  %v1797_v44 = vcombine.low %v2679_v28, %v2683_v11  ;;  %v2737_v47 = vcombine.low %v507_v32, %v508_v3  ;;  %v2309_v32 = vld [vmem:[%s2855_s1 + $0x180] sm:$0xff]   ;;  %v1827_v51 = vcombine.low %v2531_v14, %v2543_v21  ;;  %v2323_v14 = vld [vmem:[%s2855_s1 + $0x228] sm:$0xff]   ;;  %v2318_v21 = vld [vmem:[%s2855_s1 + $0x198] sm:$0xff]  }
  0x3f   : > { %2042 = vmatpush3.bf16.msra.mxu0 %v2297_v43  ;;  %v2675_v10 = vor.u32 %v478_v2, %v474_v58  ;;  %2157 = vmatprep.mubr.bf16.mxu1 %v1796_v19  ;;  %v2710_v34 = vor.u32 %v485_v26, %v481_v12  ;;  %v1799_v38 = vcombine.low %v510_v20, %v511_v27  ;;  %v2307_v43 = vld [vmem:[%s2855_s1 + $0x1c0] sm:$0xff]   ;;  %v2325_v2 = vld [vmem:[%s2855_s1 + $0x1f0] sm:$0xff]  }
  0x40   : > { %2043 = vmatprep.subr.bf16.mxu0 %v2298_v53  ;;  %v2712_v37 = vor.u32 %v492_v40, %v488_v1  ;;  %v1835_v53 = vcombine.low %v509_v4, %v510_v20  ;;  %v1831_v58 = vcombine.low %v2590_v57, %v2673_v9  ;;  %v2319_v57 = vld [vmem:[%s2855_s1 + $0x1e0] sm:$0xff]   ;;  %v1833_v3 = vcombine.low %v2647_v52, %v2679_v28  ;;  %v2327_v4 = vld [vmem:[%s2855_s1 + $0x1b0] sm:$0xff]  }
  0x41   : > { %2172 = vmatpush3.bf16.msra.mxu1 %v2299_v48  ;;  %v1795_v6 = vcombine.low %v2673_v9, %v2675_v10  ;;  %v2311_v48 = vld [vmem:[%s2855_s1 + $0x208] sm:$0xff]   ;;  %v1910_v52 = vcombine.low %v511_v27, %v2663_v0  ;;  %v1908_v9 = vcombine.low %v2683_v11, %v2339_v63 }
  0x42   : > { %2173 = vmatprep.subr.bf16.mxu1 %v2302_v62  ;;  %v1798_v42 = vcombine.low %v2710_v34, %v2712_v37  ;;  %2158 = vmatmul.mubr.bf16.gmra.mrb[4].mxu1 %v1799_v38  ;;  %v1909_v8 = vcombine.low %v2712_v37, %v2663_v0 }
  0x43   : > { %2044 = vmatpush3.bf16.msra.mxu0 %v2300_v60  ;;  %852 = vmatprep.mubr.bf16.mxu0 %v1795_v6  ;;  %v1830_v60 = vcombine.low %v2550_v30, %v2643_v50  ;;  %v2329_v30 = vld [vmem:[%s2855_s1 + $0x238] sm:$0xff]   ;;  %v2324_v50 = vld [vmem:[%s2855_s1 + $0x1a8] sm:$0xff]  }
  0x44   : > { %853 = vmatmul.mubr.bf16.gmra.mrb[8].mxu0 %v1794_v5  ;;  %2045 = vmatprep.subr.bf16.mxu0 %v2301_v17  ;;  %v2328_v5 = vld [vmem:[%s2855_s1 + $0x1f8] sm:$0xff]  }
  0x45   : > { %2174 = vmatpush3.bf16.msra.mxu1 %v2302_v62  ;;  %860 = vmatprep.mubr.bf16.mxu0 %v1798_v42  ;;  %v1834_v62 = vcombine.low %v2675_v10, %v2710_v34 }
  0x46   : > { %2175 = vmatprep.subr.bf16.mxu1 %v2305_v31  ;;  %2177 = vmatprep.mubr.bf16.mxu1 %v1826_v33 }
  0x47   : > { %2046 = vmatpush3.bf16.msra.mxu0 %v2303_v18 }
  0x48   : > { %2047 = vmatprep.subr.bf16.mxu0 %v2304_v25 }
  0x49   : > { %2176 = vmatpush3.bf16.msra.mxu1 %v2305_v31 }
  0x4a   : > { %2185 = vmatprep.subr.bf16.mxu1 %v2308_v23 }
  0x4b   : > { %2048 = vmatpush3.bf16.msra.mxu0 %v2306_v41 }
  0x4c   : > { %2085 = vmatprep.subr.bf16.mxu0 %v2307_v43  ;;  %861 = vmatmul.mubr.bf16.gmra.mrb[12].mxu0 %v1797_v44 }
  0x4d   : > { %1134 = vmatprep.mubr.bf16.mxu0 %v1825_v45  ;;  %2178 = vmatmul.mubr.bf16.vlgmr.msra.gmra.mrb[0].mxu1 %v1829_v46 }
  0x4e   : > { %2186 = vmatpush3.bf16.msra.mxu1 %v2308_v23  ;;  %2181 = vmatprep.mubr.bf16.mxu1 %v2737_v47 }
  0x4f   : > { %2187 = vmatprep.subr.bf16.mxu1 %v2311_v48 }
  0x52   : > { %2188 = vmatpush3.bf16.msra.mxu1 %v2311_v48 }
  0x53   : > { %2189 = vmatprep.subr.bf16.mxu1 %v2314_v29 }
  0x54   : > { %1135 = vmatmul.mubr.bf16.vlgmr.msra.gmra.mrb[16].mxu0 %v1824_v24 }
  0x55   : > { %2086 = vmatpush3.bf16.msra.mxu0 %v2309_v32  ;;  %1142 = vmatprep.mubr.bf16.mxu0 %v1828_v35 }
  0x56   : > { %2087 = vmatprep.subr.bf16.mxu0 %v2310_v49  ;;  %2182 = vmatmul.mubr.bf16.gmra.mrb[4].mxu1 %v1835_v53 }
  0x57   : > { %2190 = vmatpush3.bf16.msra.mxu1 %v2314_v29  ;;  %2201 = vmatprep.mubr.bf16.mxu1 %v1829_v46 }
  0x58   : > { %2191 = vmatprep.subr.bf16.mxu1 %v2317_v13 }
  0x59   : > { %2088 = vmatpush3.bf16.msra.mxu0 %v2312_v54 }
  0x5a   : > { %2089 = vmatprep.subr.bf16.mxu0 %v2313_v36 }
  0x5b   : > { %2192 = vmatpush3.bf16.msra.mxu1 %v2317_v13 }
  0x5c   : > { %1143 = vmatmul.mubr.bf16.gmra.mrb[20].mxu0 %v1827_v51  ;;  %2193 = vmatprep.subr.bf16.mxu1 %v2320_v55 }
  0x5d   : > { %2090 = vmatpush3.bf16.msra.mxu0 %v2315_v56  ;;  %1150 = vmatprep.mubr.bf16.mxu0 %v1831_v58 }
  0x5e   : > { %2091 = vmatprep.subr.bf16.mxu0 %v2316_v59 }
  0x5f   : > { %2194 = vmatpush3.bf16.msra.mxu1 %v2320_v55 }
  0x60   : > { %2195 = vmatprep.subr.bf16.mxu1 %v2323_v14 }
  0x61   : > { %2092 = vmatpush3.bf16.msra.mxu0 %v2318_v21 }
  0x62   : > { %2093 = vmatprep.subr.bf16.mxu0 %v2319_v57 }
  0x63   : > { %2196 = vmatpush3.bf16.msra.mxu1 %v2323_v14 }
  0x64   : > { %1151 = vmatmul.mubr.bf16.gmra.mrb[24].mxu0 %v1830_v60  ;;  %2197 = vmatprep.subr.bf16.mxu1 %v2326_v39 }
  0x65   : > { %2094 = vmatpush3.bf16.msra.mxu0 %v2321_v61  ;;  %1158 = vmatprep.mubr.bf16.mxu0 %v1834_v62 }
  0x66   : > { %2095 = vmatprep.subr.bf16.mxu0 %v2322_v22 }
  0x67   : > { %2198 = vmatpush3.bf16.msra.mxu1 %v2326_v39 }
  0x68   : > { %2199 = vmatprep.subr.bf16.mxu1 %v2329_v30 }
  0x69   : > { %2096 = vmatpush3.bf16.msra.mxu0 %v2324_v50 }
  0x6a   : > { %2097 = vmatprep.subr.bf16.mxu0 %v2325_v2 }
  0x6b   : > { %2200 = vmatpush3.bf16.msra.mxu1 %v2329_v30 }
  0x6c   : > { %1159 = vmatmul.mubr.bf16.gmra.mrb[28].mxu0 %v1833_v3 }
  0x6d   : > { %2098 = vmatpush3.bf16.msra.mxu0 %v2327_v4  ;;  %1463 = vmatprep.mubr.bf16.mxu0 %v1828_v35 }
  0x6e   : > { %2099 = vmatprep.subr.bf16.mxu0 %v2328_v5  ;;  %2202 = vmatmul.mubr.bf16.vlgmr.msra.gmra.mrb[0].mxu1 %v2737_v47 }
  0x6f   : > { %2205 = vmatprep.mubr.bf16.mxu1 %v1835_v53 }
  0x71   : > { %2100 = vmatpush3.bf16.msra.mxu0 %v2330_v7 }
  0x74   : > { %1464 = vmatmul.mubr.bf16.vlgmr.msra.gmra.mrb[32].mxu0 %v1827_v51 }
  0x75   : > { %1471 = vmatprep.mubr.bf16.mxu0 %v1831_v58 }
  0x76   : > { %2206 = vmatmul.mubr.bf16.gmra.mrb[4].mxu1 %v1910_v52 }
  0x7c   : > { %1472 = vmatmul.mubr.bf16.gmra.mrb[36].mxu0 %v1830_v60 }
  0x7d   : > { %1479 = vmatprep.mubr.bf16.mxu0 %v1834_v62 }
  0x84   : > { %1480 = vmatmul.mubr.bf16.gmra.mrb[40].mxu0 %v1833_v3 }
  0x85   : > { %1487 = vmatprep.mubr.bf16.mxu0 %v1909_v8 }
  0x8c   : > { %1488 = vmatmul.mubr.bf16.gmra.mrb[44].mxu0 %v1908_v9 }
 0x101   : > { %v1997_v10 = vpop.f32.mrb[0].mxu0 }
 0x102   : > { %v1998_v28 = vpop.f32.mrb[1].mxu0 }
 0x103   : > { %v1999_v12 = vadd.f32 %v1998_v28, %v1997_v10  ;;  %v2000_v15 = vpop.f32.mrb[2].mxu0 }
 0x104   : > { %v2001_v1 = vpop.f32.mrb[3].mxu0 }
 0x105   : > { %v2002_v16 = vadd.f32 %v2001_v1, %v2000_v15 }
 0x109   : > { %v2003_v17 = vpop.f32.mrb[4].mxu0 }
 0x10a   : > { %v2004_v18 = vpop.f32.mrb[5].mxu0 }
 0x10b   : > { %v2005_v6 = vadd.f32 %v2004_v18, %v2003_v17  ;;  %v2006_v19 = vpop.f32.mrb[6].mxu0 }
 0x10c   : > { %v2007_v20 = vpop.f32.mrb[7].mxu0 }
 0x10d   : > { %v2008_v25 = vadd.f32 %v2007_v20, %v2006_v19 }
 0x117   : > { %v2009_v26 = vpop.f32.mrb[8].mxu0 }
 0x118   : > { %v2010_v0 = vpop.f32.mrb[9].mxu0 }
 0x119   : > { %v2011_v40 = vadd.f32 %v2010_v0, %v2009_v26  ;;  %v2012_v27 = vpop.f32.mrb[10].mxu0 }
 0x11a   : > { %v2013_v31 = vpop.f32.mrb[11].mxu0 }
 0x11b   : > { %v2014_v33 = vadd.f32 %v2013_v31, %v2012_v27 }
 0x11f   : > { %v2015_v63 = vpop.f32.mrb[12].mxu0 }
 0x120   : > { %v2016_v11 = vpop.f32.mrb[13].mxu0 }
 0x121   : > { %v2017_v34 = vadd.f32 %v2016_v11, %v2015_v63  ;;  %v2018_v37 = vpop.f32.mrb[14].mxu0 }
 0x122   : > { %v2019_v38 = vpop.f32.mrb[15].mxu0 }
 0x123   : > { %v2020_v41 = vadd.f32 %v2019_v38, %v2018_v37 }
 0x127   : > { %v2049_v42 = vpop.f32.mrb[16].mxu0 }
 0x128   : > { %v2050_v23 = vpop.f32.mrb[17].mxu0 }
 0x129   : > { %v2051_v43 = vadd.f32 %v2050_v23, %v2049_v42  ;;  %v2052_v44 = vpop.f32.mrb[18].mxu0 }
 0x12a   : > { %v2053_v45 = vpop.f32.mrb[19].mxu0 }
 0x12b   : > { %v2212_v46 = vadd.f32 %v2051_v43, %v1999_v12  ;;  %v2054_v47 = vadd.f32 %v2053_v45, %v2052_v44 }
 0x12d   : > { %v2218_v48 = vadd.f32 %v2054_v47, %v2002_v16 }
 0x12f   : > { %v2055_v24 = vpop.f32.mrb[20].mxu0 }
 0x130   : > { %v2056_v29 = vpop.f32.mrb[21].mxu0 }
 0x131   : > { %v2057_v32 = vadd.f32 %v2056_v29, %v2055_v24  ;;  %v2058_v35 = vpop.f32.mrb[22].mxu0 }
 0x132   : > { %v2059_v49 = vpop.f32.mrb[23].mxu0 }
 0x133   : > { %v2209_v53 = vadd.f32 %v2057_v32, %v2005_v6  ;;  %v2060_v13 = vadd.f32 %v2059_v49, %v2058_v35 }
 0x135   : > { %v2215_v54 = vadd.f32 %v2060_v13, %v2008_v25 }
 0x137   : > { %v2061_v36 = vpop.f32.mrb[24].mxu0 }
 0x138   : > { %v2062_v51 = vpop.f32.mrb[25].mxu0 }
 0x139   : > { %v2063_v55 = vadd.f32 %v2062_v51, %v2061_v36  ;;  %v2064_v56 = vpop.f32.mrb[26].mxu0 }
 0x13a   : > { %v2065_v58 = vpop.f32.mrb[27].mxu0 }
 0x13b   : > { %v2224_v59 = vadd.f32 %v2063_v55, %v2011_v40  ;;  %v2066_v14 = vadd.f32 %v2065_v58, %v2064_v56 }
 0x13d   : > { %v2230_v21 = vadd.f32 %v2066_v14, %v2014_v33 }
 0x13f   : > { %v2067_v57 = vpop.f32.mrb[28].mxu0 }
 0x140   : > { %v2068_v60 = vpop.f32.mrb[29].mxu0 }
 0x141   : > { %v2069_v39 = vadd.f32 %v2068_v60, %v2067_v57  ;;  %v2070_v61 = vpop.f32.mrb[30].mxu0  ;;  %v2203_v62 = vpop.f32.mrb[0].mxu1 }
 0x142   : > { %v2071_v22 = vpop.f32.mrb[31].mxu0  ;;  %v1530_v30 = vpop.f32.mrb[1].mxu1 }
 0x143   : > { %v2830_v50 = vadd.f32 %v2069_v39, %v2017_v34  ;;  %v2072_v2 = vadd.f32 %v2071_v22, %v2070_v61  ;;  %v2204_v3 = vpop.f32.mrb[2].mxu1 }
 0x144   : > { %v1533_v4 = vpop.f32.mrb[3].mxu1 }
 0x145   : > { %v2832_v5 = vadd.f32 %v2072_v2, %v2020_v41 }
 0x147   : > { %v2101_v7 = vpop.f32.mrb[32].mxu0 }
 0x148   : > { %v2102_v52 = vpop.f32.mrb[33].mxu0 }
 0x149   : > { %v2103_v8 = vadd.f32 %v2102_v52, %v2101_v7  ;;  %v2104_v9 = vpop.f32.mrb[34].mxu0  ;;  %v2207_v10 = vpop.f32.mrb[4].mxu1 }
 0x14a   : > { %v2105_v28 = vpop.f32.mrb[35].mxu0  ;;  %v1546_v12 = vpop.f32.mrb[5].mxu1 }
 0x14b   : > { %v2213_v15 = vadd.f32 %v2212_v46, %v2103_v8  ;;  %v2106_v1 = vadd.f32 %v2105_v28, %v2104_v9  ;;  %v2208_v16 = vpop.f32.mrb[6].mxu1 }
 0x14c   : > { %v1549_v17 = vpop.f32.mrb[7].mxu1 }
 0x14d   : > { %v2214_v18 = vadd.f32 %v2213_v15, %v1530_v30  ;;  %v2219_v6 = vadd.f32 %v2218_v48, %v2106_v1 }
 0x14f   : > { %v2220_v19 = vadd.f32 %v2219_v6, %v1533_v4  ;;  %v2107_v20 = vpop.f32.mrb[36].mxu0  ;;  %v1598_v25 = vmul.f32 %v2214_v18, %v2214_v18 }
 0x150   : > { %v2108_v26 = vpop.f32.mrb[37].mxu0 }
 0x151   : > { %v1958_v0 = vpack.c.bf16 %v2220_v19, %v2214_v18  ;;  %v1585_v40 = vadd.f32 %v2220_v19, %v2214_v18  ;;  %v1599_v27 = vmul.f32 %v2220_v19, %v2220_v19  ;;  %v2109_v31 = vadd.f32 %v2108_v26, %v2107_v20  ;;  %v2110_v33 = vpop.f32.mrb[38].mxu0 }
 0x152   : > { %v2111_v63 = vpop.f32.mrb[39].mxu0  ;;  %v2340_v20 = vmov 1966171168  }
 0x153   : > { %1959 = vst [vmem:[%s2839_s20] sm:$0xff] %v1958_v0   ;;  %v1606_v11 = vadd.f32 %v1599_v27, %v1598_v25  ;;  %v2210_v34 = vadd.f32 %v2209_v53, %v2109_v31  ;;  %v2112_v37 = vadd.f32 %v2111_v63, %v2110_v33  ;;  %v1623_v25 = vunpack.c.l.s4 %v2340_v20 }
 0x155   : > { %v2211_v38 = vadd.f32 %v2210_v34, %v2203_v62  ;;  %v2216_v41 = vadd.f32 %v2215_v54, %v2112_v37 }
 0x157   : > { %v1586_v42 = vadd.f32 %v2211_v38, %v1585_v40  ;;  %v1600_v23 = vmul.f32 %v2211_v38, %v2211_v38  ;;  %v2217_v43 = vadd.f32 %v2216_v41, %v2204_v3  ;;  %v2113_v44 = vpop.f32.mrb[40].mxu0 }
 0x158   : > { %v2114_v45 = vpop.f32.mrb[41].mxu0 }
 0x159   : > { %v1607_v46 = vadd.f32 %v1606_v11, %v1600_v23  ;;  %v1963_v47 = vpack.c.bf16 %v2217_v43, %v2211_v38  ;;  %v1587_v48 = vadd.f32 %v2217_v43, %v1586_v42  ;;  %v1601_v24 = vmul.f32 %v2217_v43, %v2217_v43  ;;  %v2116_v29 = vpop.f32.mrb[42].mxu0 }
 0x15a   : > { %v2115_v32 = vadd.f32 %v2114_v45, %v2113_v44  ;;  %v2117_v35 = vpop.f32.mrb[43].mxu0 }
 0x15b   : > { %1978 = vst [vmem:[%s2839_s20 + $0x8] sm:$0xff] %v1963_v47   ;;  %v1608_v49 = vadd.f32 %v1607_v46, %v1601_v24  ;;  %v2118_v13 = vadd.f32 %v2117_v35, %v2116_v29 }
 0x15c   : > { %v2225_v53 = vadd.f32 %v2224_v59, %v2115_v32 }
 0x15d   : > { %v2231_v36 = vadd.f32 %v2230_v21, %v2118_v13 }
 0x15e   : > { %v2226_v51 = vadd.f32 %v2225_v53, %v1546_v12 }
 0x15f   : > { %v2232_v54 = vadd.f32 %v2231_v36, %v1549_v17  ;;  %v2119_v55 = vpop.f32.mrb[44].mxu0 }
 0x160   : > { %v1588_v56 = vadd.f32 %v2226_v51, %v1587_v48  ;;  %v1602_v58 = vmul.f32 %v2226_v51, %v2226_v51  ;;  %v2120_v14 = vpop.f32.mrb[45].mxu0 }
 0x161   : > { %v1968_v57 = vpack.c.bf16 %v2232_v54, %v2226_v51  ;;  %v1603_v60 = vmul.f32 %v2232_v54, %v2232_v54  ;;  %v2121_v39 = vadd.f32 %v2120_v14, %v2119_v55  ;;  %v2122_v61 = vpop.f32.mrb[46].mxu0 }
 0x162   : > { %v1609_v62 = vadd.f32 %v1608_v49, %v1602_v58  ;;  %v1589_v22 = vadd.f32 %v2232_v54, %v1588_v56  ;;  %v2123_v30 = vpop.f32.mrb[47].mxu0 }
 0x163   : > { %1979 = vst [vmem:[%s2839_s20 + $0x10] sm:$0xff] %v1968_v57   ;;  %v2222_v2 = vadd.f32 %v2830_v50, %v2121_v39  ;;  %v2124_v3 = vadd.f32 %v2123_v30, %v2122_v61 }
 0x164   : > { %v1610_v59 = vadd.f32 %v1609_v62, %v1603_v60 }
 0x165   : > { %v2223_v21 = vadd.f32 %v2222_v2, %v2207_v10  ;;  %v2228_v4 = vadd.f32 %v2832_v5, %v2124_v3  ;;  %v1625_v10 = vlaneseq }
 0x167   : > { %v1590_v7 = vadd.f32 %v2223_v21, %v1589_v22  ;;  %v1604_v52 = vmul.f32 %v2223_v21, %v2223_v21  ;;  %v2229_v8 = vadd.f32 %v2228_v4, %v2208_v16  ;;  %v1624_v16 = vunpack.c.0.s8 %v1623_v25 }
 0x168   : > { %v1626_v27 = vshrl.u32 %v1625_v10, 7  ;;  %vm1639_vm14 = vcmp.lt.s32.totalorder %v1625_v10, 256 }
 0x169   : > { %v1611_v9 = vadd.f32 %v1610_v59, %v1604_v52  ;;  %v1973_v28 = vpack.c.bf16 %v2229_v8, %v2223_v21  ;;  %v1591_v12 = vadd.f32 %v2229_v8, %v1590_v7  ;;  %v1605_v15 = vmul.f32 %v2229_v8, %v2229_v8 }
 0x16a   : > { %v1627_v11 = vsub.s32 %v1624_v16, %v1626_v27 }
 0x16b   : > { %1980 = vst [vmem:[%s2839_s20 + $0x18] sm:$0xff] %v1973_v28   ;;  %v1592_v1 = vrot.slane %v1591_v12, 4  ;;  %v1612_v17 = vadd.f32 %v1611_v9, %v1605_v15 }
 0x16d   : > { %v1593_v18 = vadd.f32 %v1592_v1, %v1591_v12  ;;  %v1613_v6 = vrot.slane %v1612_v17, 4 }
 0x16f   : > { %v1594_v19 = vrot.slane %v1593_v18, 2  ;;  %v1614_v50 = vadd.f32 %v1613_v6, %v1612_v17 }
 0x171   : > { %v1595_v26 = vadd.f32 %v1594_v19, %v1593_v18  ;;  %v1615_v5 = vrot.slane %v1614_v50, 2 }
 0x173   : > { %v1596_v0 = vrot.slane %v1595_v26, 1  ;;  %v1616_v40 = vadd.f32 %v1615_v5, %v1614_v50 }
 0x175   : > { %v1617_v31 = vrot.slane %v1616_v40, 1  ;;  %v1597_v33 = vadd.f32 %v1596_v0, %v1595_v26 }
 0x177   : > { %v1618_v63 = vadd.f32 %v1617_v31, %v1616_v40 }
 0x179   : > { %v1621_v34 = vcombine.low %v1597_v33, %v1618_v63 }
 0x17b   : > { %v1628_v37 = vrot.slane %v1621_v34, %v1627_v11 }
 0x17d   : > { %v1635_v38 = vrot.slane %v1628_v37, %v1627_v11 }
 0x17f   : > { %1641 = vst.msk [vmem:[%s263_s4] sm:$0x3] %vm1639_vm14, %v1635_v38 }
 0x180 PF: > { %s18_s23 = sadd.s32 1, %s2337_s23  }
 0x181   : > { %p15_p4 = scmp.ge.s32.totalorder %s18_s23, 4  }
 0x183   :  { %17 = sbr.rel (!%p15_p4) target bundleno = 2 (0x2), region = 84 }

</bundles_post_ra>
